<compile_context>
chip_gen: v7x
topology: tpu7x:2x2x1
jax: 0.10.0
libtpu: 0.0.40
codegen_flags: <defaults>
</compile_context>

<pallas_src>
import functools

import jax
import jax.numpy as jnp
from jax.experimental import pallas as pl
from jax.experimental.pallas import tpu as pltpu

IN_DIM = 784
H1 = 500          # hidden_sizes[0]
H2 = 500          # cut_layer
H3 = 128          # hidden_sizes[1]
OUT_DIM = 10

IN_PAD = 896      # 7 * 128 lane-aligned contraction dim for the first matmul
H1_PAD = 512
H2_PAD = 512
H3_PAD = 128
OUT_PAD = 128
NEG_BIG = -1e30   # neutralizes padded logits in log_softmax

MIN_TILE_B = 16   # bf16 packs 16 sublanes per vreg -> minimum clean batch tile


def _round_up(x, m):
    return (x + m - 1) // m * m


def _cdiv(a, b):
    return -(-a // b)


def splitnn_kernel(x_ref,
                   w1_ref, b1_ref,
                   w2_ref, b2_ref,
                   w3_ref, b3_ref,
                   w4_ref, b4_ref,
                   out_ref):
    """Fused forward for one [TILE_B, IN_PAD] batch tile.

    bf16 matmul operands -> f32 accumulation; elementwise path stays f32
    (v5e VPU/EUP have no bf16).
    """
    x = x_ref[...]                                                # bf16 [T, 896]

    h = jnp.dot(x, w1_ref[...], preferred_element_type=jnp.float32) + b1_ref[...]
    h = jnp.maximum(h, 0.0)

    h = jnp.dot(h.astype(jnp.bfloat16), w2_ref[...],
                preferred_element_type=jnp.float32) + b2_ref[...]
    h = jnp.maximum(h, 0.0)

    h = jnp.dot(h.astype(jnp.bfloat16), w3_ref[...],
                preferred_element_type=jnp.float32) + b3_ref[...]
    h = jnp.maximum(h, 0.0)

    logits = jnp.dot(h.astype(jnp.bfloat16), w4_ref[...],
                     preferred_element_type=jnp.float32) + b4_ref[...]

    # log_softmax over the last axis. Padded columns (10..127) carry a -1e30
    # bias, so they never win the max and their exp() underflows to 0.
    m = jnp.max(logits, axis=-1, keepdims=True)
    shifted = logits - m
    lse = jnp.log(jnp.sum(jnp.exp(shifted), axis=-1, keepdims=True))
    out_ref[...] = (shifted - lse).astype(out_ref.dtype)


def init_params(key):
    """Deterministic init mimicking PyTorch nn.Linear default
    (uniform(-1/sqrt(fan_in), 1/sqrt(fan_in))).

    Weights stored [in, out] (transposed vs nn.Linear), biases as [1, out]."""
    sizes = [(IN_DIM, H1), (H1, H2), (H2, H3), (H3, OUT_DIM)]
    params = {}
    keys = jax.random.split(key, 2 * len(sizes))
    for i, (fan_in, fan_out) in enumerate(sizes):
        bound = 1.0 / jnp.sqrt(jnp.float32(fan_in))
        params[f"w{i+1}"] = jax.random.uniform(
            keys[2 * i], (fan_in, fan_out), jnp.float32, -bound, bound)
        params[f"b{i+1}"] = jax.random.uniform(
            keys[2 * i + 1], (1, fan_out), jnp.float32, -bound, bound)
    return params


def prepare_params(params):
    """Pad to lane-dense shapes (784->896, 500->512, 10->128), cast weights to bf16.

    Call once and keep the result device-resident across forward calls
    (avoids re-padding / re-uploading weights for every small batch)."""
    w1 = jnp.pad(params["w1"], ((0, IN_PAD - IN_DIM), (0, H1_PAD - H1)))
    b1 = jnp.pad(params["b1"], ((0, 0), (0, H1_PAD - H1)))
    w2 = jnp.pad(params["w2"], ((0, H1_PAD - H1), (0, H2_PAD - H2)))
    b2 = jnp.pad(params["b2"], ((0, 0), (0, H2_PAD - H2)))
    w3 = jnp.pad(params["w3"], ((0, H2_PAD - H2), (0, 0)))
    b3 = params["b3"]
    w4 = jnp.pad(params["w4"], ((0, 0), (0, OUT_PAD - OUT_DIM)))
    b4 = jnp.pad(params["b4"], ((0, 0), (0, OUT_PAD - OUT_DIM)),
                 constant_values=NEG_BIG)
    return dict(
        w1=w1.astype(jnp.bfloat16), b1=b1.astype(jnp.float32),
        w2=w2.astype(jnp.bfloat16), b2=b2.astype(jnp.float32),
        w3=w3.astype(jnp.bfloat16), b3=b3.astype(jnp.float32),
        w4=w4.astype(jnp.bfloat16), b4=b4.astype(jnp.float32),
    )


def _choose_tiling(B, max_tile_b):
    """Pad-waste-aware, 16-aligned batch tile; >=2 grid steps when possible
    so the batch axis can shard across both v7x TensorCores."""
    n_tiles = _cdiv(B, max_tile_b)
    if n_tiles == 1 and B >= 2 * MIN_TILE_B:
        n_tiles = 2
    tile_b = min(_round_up(_cdiv(B, n_tiles), MIN_TILE_B), max_tile_b)
    pb = _round_up(B, tile_b)
    return tile_b, pb


@functools.partial(jax.jit, static_argnames=("max_tile_b",))
def splitnn_forward(x, padded_params, *, max_tile_b=1024):
    """x: [B, 784] float32. Returns [B, 10] float32 log-probs."""
    B = x.shape[0]
    tile_b, pb = _choose_tiling(B, max_tile_b)

    # Pad batch to pb rows and features 784 -> 896 lane-aligned columns.
    xp = jnp.pad(x, ((0, pb - B), (0, IN_PAD - IN_DIM)))
    xp = xp.astype(jnp.bfloat16)                     # halve x DMA; MXU is bf16-native

    p = padded_params
    grid = (pb // tile_b,)

    def const_spec(shape):                           # weights/biases resident in VMEM
        return pl.BlockSpec(shape, lambda i: (0, 0))

    flops = 2 * pb * (IN_PAD * H1_PAD + H1_PAD * H2_PAD
                      + H2_PAD * H3_PAD + H3_PAD * OUT_PAD)
    bytes_accessed = (
        xp.size * 2
        + sum(int(p[k].size) * 2 for k in ("w1", "w2", "w3", "w4"))
        + sum(int(p[k].size) * 4 for k in ("b1", "b2", "b3", "b4"))
        + pb * OUT_PAD * 4)
    cost = pl.CostEstimate(flops=flops,
                           transcendentals=pb * (OUT_PAD + 1),
                           bytes_accessed=bytes_accessed)

    out = pl.pallas_call(
        splitnn_kernel,
        out_shape=jax.ShapeDtypeStruct((pb, OUT_PAD), jnp.float32),
        grid=grid,
        in_specs=[
            pl.BlockSpec((tile_b, IN_PAD), lambda i: (i, 0)),   # x batch tile
            const_spec((IN_PAD, H1_PAD)), const_spec((1, H1_PAD)),
            const_spec((H1_PAD, H2_PAD)), const_spec((1, H2_PAD)),
            const_spec((H2_PAD, H3_PAD)), const_spec((1, H3_PAD)),
            const_spec((H3_PAD, OUT_PAD)), const_spec((1, OUT_PAD)),
        ],
        out_specs=pl.BlockSpec((tile_b, OUT_PAD), lambda i: (i, 0)),
        compiler_params=pltpu.CompilerParams(
            dimension_semantics=("parallel",),       # 2x TC sharding on v7x
            # Large tiles overflow v5e's 16 MiB / v7x's 32 MiB default scoped
            # limit; 48 MiB is safe on all generations (v7x physical = 64 MiB).
            vmem_limit_bytes=48 << 20),
        cost_estimate=cost,
    )(xp, p["w1"], p["b1"], p["w2"], p["b2"], p["w3"], p["b3"], p["w4"], p["b4"])

    return out[:B, :OUT_DIM]


def splitnn_reference(x, params):
    """Plain-JAX reference mirroring the kernel's bf16-matmul / f32-accumulate path.

    Note: this intentionally matches the kernel's reduced-precision matmuls; it
    deviates from the original f32 PyTorch forward at roughly the 1e-2 level,
    and the 5e-3 tolerance below would not hold against a true f32 reference."""
    def mm(a, w):
        return jnp.dot(a.astype(jnp.bfloat16), w.astype(jnp.bfloat16),
                       preferred_element_type=jnp.float32)
    h = jnp.maximum(mm(x, params["w1"]) + params["b1"], 0.0)
    h = jnp.maximum(mm(h, params["w2"]) + params["b2"], 0.0)
    h = jnp.maximum(mm(h, params["w3"]) + params["b3"], 0.0)
    logits = mm(h, params["w4"]) + params["b4"]
    return jax.nn.log_softmax(logits, axis=1)


if __name__ == "__main__":
    key = jax.random.PRNGKey(0)
    pkey, xkey = jax.random.split(key)

    params = init_params(pkey)
    padded = prepare_params(params)   # prepared once, reused across calls

    # Two batch sizes: B=8 (single 16-row tile) and B=100 (two 64-row tiles,
    # exercises the pad-waste-aware multi-step grid path).
    for B in (8, 100):
        x = jax.random.normal(jax.random.fold_in(xkey, B), (B, IN_DIM), jnp.float32)

        out = splitnn_forward(x, padded)
        out = jax.block_until_ready(out)
        assert out.shape == (B, OUT_DIM)

        ref = splitnn_reference(x, params)
        max_err = jnp.max(jnp.abs(out - ref))
        assert jnp.allclose(out, ref, atol=5e-3, rtol=5e-3), (
            f"mismatch vs ref at B={B} (max abs err={max_err})")

    print("KERNEL_OK")
</pallas_src>

<mosaic_0001>
module attributes {stable_mosaic.version = 11 : i64} {
  func.func @splitnn_kernel(%arg0: i32, %arg1: memref<16x896xbf16, #tpu.memory_space<vmem>>, %arg2: memref<896x512xbf16, #tpu.memory_space<vmem>>, %arg3: memref<1x512xf32, #tpu.memory_space<vmem>>, %arg4: memref<512x512xbf16, #tpu.memory_space<vmem>>, %arg5: memref<1x512xf32, #tpu.memory_space<vmem>>, %arg6: memref<512x128xbf16, #tpu.memory_space<vmem>>, %arg7: memref<1x128xf32, #tpu.memory_space<vmem>>, %arg8: memref<128x128xbf16, #tpu.memory_space<vmem>>, %arg9: memref<1x128xf32, #tpu.memory_space<vmem>>, %arg10: memref<16x128xf32, #tpu.memory_space<vmem>>) attributes {dimension_semantics = [#tpu.dimension_semantics<parallel>], iteration_bounds = array<i64: 1>, scalar_prefetch = 0 : i64, scratch_operands = 0 : i64, tpu.core_type = #tpu.core_type<tc>, window_params = [{transform_indices = @transform_0, window_bounds = array<i64: 16, 896>}, {pipeline_mode = #tpu.pipeline_mode<synchronous>, transform_indices = @transform_1, window_bounds = array<i64: 896, 512>}, {pipeline_mode = #tpu.pipeline_mode<synchronous>, transform_indices = @transform_2, window_bounds = array<i64: 1, 512>}, {pipeline_mode = #tpu.pipeline_mode<synchronous>, transform_indices = @transform_3, window_bounds = array<i64: 512, 512>}, {pipeline_mode = #tpu.pipeline_mode<synchronous>, transform_indices = @transform_4, window_bounds = array<i64: 1, 512>}, {pipeline_mode = #tpu.pipeline_mode<synchronous>, transform_indices = @transform_5, window_bounds = array<i64: 512, 128>}, {pipeline_mode = #tpu.pipeline_mode<synchronous>, transform_indices = @transform_6, window_bounds = array<i64: 1, 128>}, {pipeline_mode = #tpu.pipeline_mode<synchronous>, transform_indices = @transform_7, window_bounds = array<i64: 128, 128>}, {pipeline_mode = #tpu.pipeline_mode<synchronous>, transform_indices = @transform_8, window_bounds = array<i64: 1, 128>}, {transform_indices = @transform_9, window_bounds = array<i64: 16, 128>}]} {
    %c0 = arith.constant 0 : index
    %c0_0 = arith.constant 0 : index
    %0 = vector.load %arg1[%c0, %c0_0] : memref<16x896xbf16, #tpu.memory_space<vmem>>, vector<16x896xbf16>
    %c0_1 = arith.constant 0 : index
    %c0_2 = arith.constant 0 : index
    %1 = vector.load %arg2[%c0_1, %c0_2] : memref<896x512xbf16, #tpu.memory_space<vmem>>, vector<896x512xbf16>
    %cst = arith.constant dense<0.000000e+00> : vector<16x512xf32>
    %2 = tpu.matmul %0, %1, %cst {dimension_numbers = #tpu.dot_dimension_numbers<[1], [0], [0], [1], [0, 0, 1, 1], [], []>} : vector<16x896xbf16>, vector<896x512xbf16>, vector<16x512xf32> -> vector<16x512xf32>
    %c0_3 = arith.constant 0 : index
    %c0_4 = arith.constant 0 : index
    %3 = vector.load %arg3[%c0_3, %c0_4] : memref<1x512xf32, #tpu.memory_space<vmem>>, vector<1x512xf32>
    %4 = vector.broadcast %3 : vector<1x512xf32> to vector<16x512xf32>
    %5 = arith.addf %2, %4 : vector<16x512xf32>
    %cst_5 = arith.constant 0.000000e+00 : f32
    %6 = vector.broadcast %cst_5 : f32 to vector<16x512xf32>
    %7 = arith.maximumf %5, %6 : vector<16x512xf32>
    %8 = arith.truncf %7 : vector<16x512xf32> to vector<16x512xbf16>
    %c0_6 = arith.constant 0 : index
    %c0_7 = arith.constant 0 : index
    %9 = vector.load %arg4[%c0_6, %c0_7] : memref<512x512xbf16, #tpu.memory_space<vmem>>, vector<512x512xbf16>
    %cst_8 = arith.constant dense<0.000000e+00> : vector<16x512xf32>
    %10 = tpu.matmul %8, %9, %cst_8 {dimension_numbers = #tpu.dot_dimension_numbers<[1], [0], [0], [1], [0, 0, 1, 1], [], []>} : vector<16x512xbf16>, vector<512x512xbf16>, vector<16x512xf32> -> vector<16x512xf32>
    %c0_9 = arith.constant 0 : index
    %c0_10 = arith.constant 0 : index
    %11 = vector.load %arg5[%c0_9, %c0_10] : memref<1x512xf32, #tpu.memory_space<vmem>>, vector<1x512xf32>
    %12 = vector.broadcast %11 : vector<1x512xf32> to vector<16x512xf32>
    %13 = arith.addf %10, %12 : vector<16x512xf32>
    %cst_11 = arith.constant 0.000000e+00 : f32
    %14 = vector.broadcast %cst_11 : f32 to vector<16x512xf32>
    %15 = arith.maximumf %13, %14 : vector<16x512xf32>
    %16 = arith.truncf %15 : vector<16x512xf32> to vector<16x512xbf16>
    %c0_12 = arith.constant 0 : index
    %c0_13 = arith.constant 0 : index
    %17 = vector.load %arg6[%c0_12, %c0_13] : memref<512x128xbf16, #tpu.memory_space<vmem>>, vector<512x128xbf16>
    %cst_14 = arith.constant dense<0.000000e+00> : vector<16x128xf32>
    %18 = tpu.matmul %16, %17, %cst_14 {dimension_numbers = #tpu.dot_dimension_numbers<[1], [0], [0], [1], [0, 0, 1, 1], [], []>} : vector<16x512xbf16>, vector<512x128xbf16>, vector<16x128xf32> -> vector<16x128xf32>
    %c0_15 = arith.constant 0 : index
    %c0_16 = arith.constant 0 : index
    %19 = vector.load %arg7[%c0_15, %c0_16] : memref<1x128xf32, #tpu.memory_space<vmem>>, vector<1x128xf32>
    %20 = vector.broadcast %19 : vector<1x128xf32> to vector<16x128xf32>
    %21 = arith.addf %18, %20 : vector<16x128xf32>
    %cst_17 = arith.constant 0.000000e+00 : f32
    %22 = vector.broadcast %cst_17 : f32 to vector<16x128xf32>
    %23 = arith.maximumf %21, %22 : vector<16x128xf32>
    %24 = arith.truncf %23 : vector<16x128xf32> to vector<16x128xbf16>
    %c0_18 = arith.constant 0 : index
    %c0_19 = arith.constant 0 : index
    %25 = vector.load %arg8[%c0_18, %c0_19] : memref<128x128xbf16, #tpu.memory_space<vmem>>, vector<128x128xbf16>
    %cst_20 = arith.constant dense<0.000000e+00> : vector<16x128xf32>
    %26 = tpu.matmul %24, %25, %cst_20 {dimension_numbers = #tpu.dot_dimension_numbers<[1], [0], [0], [1], [0, 0, 1, 1], [], []>} : vector<16x128xbf16>, vector<128x128xbf16>, vector<16x128xf32> -> vector<16x128xf32>
    %c0_21 = arith.constant 0 : index
    %c0_22 = arith.constant 0 : index
    %27 = vector.load %arg9[%c0_21, %c0_22] : memref<1x128xf32, #tpu.memory_space<vmem>>, vector<1x128xf32>
    %28 = vector.broadcast %27 : vector<1x128xf32> to vector<16x128xf32>
    %29 = arith.addf %26, %28 : vector<16x128xf32>
    %cst_23 = arith.constant dense<0xFF800000> : vector<16xf32>
    %30 = vector.multi_reduction <maximumf>, %29, %cst_23 [1] : vector<16x128xf32> to vector<16xf32>
    %31 = vector.shape_cast %30 : vector<16xf32> to vector<16x1xf32>
    %32 = vector.broadcast %31 : vector<16x1xf32> to vector<16x128xf32>
    %33 = arith.subf %29, %32 : vector<16x128xf32>
    %34 = math.exp %33 : vector<16x128xf32>
    %cst_24 = arith.constant dense<0.000000e+00> : vector<16xf32>
    %35 = vector.multi_reduction <add>, %34, %cst_24 [1] : vector<16x128xf32> to vector<16xf32>
    %36 = vector.shape_cast %35 : vector<16xf32> to vector<16x1xf32>
    %37 = math.log %36 : vector<16x1xf32>
    %38 = vector.broadcast %37 : vector<16x1xf32> to vector<16x128xf32>
    %39 = arith.subf %33, %38 : vector<16x128xf32>
    %c0_25 = arith.constant 0 : index
    %c0_26 = arith.constant 0 : index
    %40 = vector.load %arg10[%c0_25, %c0_26] : memref<16x128xf32, #tpu.memory_space<vmem>>, vector<16x128xf32>
    tpu.vector_store %arg10[%c0_25, %c0_26], %39 {strides = array<i32>} : memref<16x128xf32, #tpu.memory_space<vmem>>, vector<16x128xf32>,
    return
  }
  func.func @transform_0(%arg0: i32) -> (i32, i32) {
    %c0_i32 = arith.constant 0 : i32
    %c0_i32_0 = arith.constant 0 : i32
    return %arg0, %c0_i32 : i32, i32
  }
  func.func @transform_1(%arg0: i32) -> (i32, i32) {
    %c0_i32 = arith.constant 0 : i32
    %c0_i32_0 = arith.constant 0 : i32
    %c0_i32_1 = arith.constant 0 : i32
    return %c0_i32, %c0_i32_0 : i32, i32
  }
  func.func @transform_2(%arg0: i32) -> (i32, i32) {
    %c0_i32 = arith.constant 0 : i32
    %c0_i32_0 = arith.constant 0 : i32
    %c0_i32_1 = arith.constant 0 : i32
    return %c0_i32, %c0_i32_0 : i32, i32
  }
  func.func @transform_3(%arg0: i32) -> (i32, i32) {
    %c0_i32 = arith.constant 0 : i32
    %c0_i32_0 = arith.constant 0 : i32
    %c0_i32_1 = arith.constant 0 : i32
    return %c0_i32, %c0_i32_0 : i32, i32
  }
  func.func @transform_4(%arg0: i32) -> (i32, i32) {
    %c0_i32 = arith.constant 0 : i32
    %c0_i32_0 = arith.constant 0 : i32
    %c0_i32_1 = arith.constant 0 : i32
    return %c0_i32, %c0_i32_0 : i32, i32
  }
  func.func @transform_5(%arg0: i32) -> (i32, i32) {
    %c0_i32 = arith.constant 0 : i32
    %c0_i32_0 = arith.constant 0 : i32
    %c0_i32_1 = arith.constant 0 : i32
    return %c0_i32, %c0_i32_0 : i32, i32
  }
  func.func @transform_6(%arg0: i32) -> (i32, i32) {
    %c0_i32 = arith.constant 0 : i32
    %c0_i32_0 = arith.constant 0 : i32
    %c0_i32_1 = arith.constant 0 : i32
    return %c0_i32, %c0_i32_0 : i32, i32
  }
  func.func @transform_7(%arg0: i32) -> (i32, i32) {
    %c0_i32 = arith.constant 0 : i32
    %c0_i32_0 = arith.constant 0 : i32
    %c0_i32_1 = arith.constant 0 : i32
    return %c0_i32, %c0_i32_0 : i32, i32
  }
  func.func @transform_8(%arg0: i32) -> (i32, i32) {
    %c0_i32 = arith.constant 0 : i32
    %c0_i32_0 = arith.constant 0 : i32
    %c0_i32_1 = arith.constant 0 : i32
    return %c0_i32, %c0_i32_0 : i32, i32
  }
  func.func @transform_9(%arg0: i32) -> (i32, i32) {
    %c0_i32 = arith.constant 0 : i32
    %c0_i32_0 = arith.constant 0 : i32
    return %arg0, %c0_i32 : i32, i32
  }
}

</mosaic_0001>

<bundles_post_ra>
// kernel: splitnn_forward.1
= control target key start
LH: loop header
LB: loop body
LE: loop exit
PB: predicated region body
PF: predicated region fallthrough
CT: control target
= control target key end

     0   :  { %14 = vsyncpa [#allocation3], 0  ;;  %s4691_s0 = inlined_call_operand.vmem [shape: bf16[16,896], index: 0, kind: input, shape index: {}]   ;;  %s4692_s1 = inlined_call_operand.hbm [shape: bf16[896,512], index: 1, kind: input, shape index: {}]   ;;  %s4693_s2 = inlined_call_operand.vmem [shape: f32[1,512], index: 2, kind: input, shape index: {}]   ;;  %s4694_s3 = inlined_call_operand.hbm [shape: bf16[512,512], index: 3, kind: input, shape index: {}]   ;;  %s4695_s4 = inlined_call_operand.vmem [shape: f32[1,512], index: 4, kind: input, shape index: {}]   ;;  %s4696_s5 = inlined_call_operand.hbm [shape: bf16[512,128], index: 5, kind: input, shape index: {}]   ;;  %s4697_s6 = inlined_call_operand.vmem [shape: f32[1,128], index: 6, kind: input, shape index: {}]   ;;  %s4698_s7 = inlined_call_operand.vmem [shape: bf16[128,128], index: 7, kind: input, shape index: {}]   ;;  %s4699_s8 = inlined_call_operand.vmem [shape: f32[1,128], index: 8, kind: input, shape index: {}]   ;;  %s4700_s9 = inlined_call_operand.vmem [shape: f32[16,128], index: 9, kind: output, shape index: {}]  }
   0x1   :  { %15 = vsyncpa [#allocation5], 0  ;;  %s4490_s30 = smov [#allocation4]   ;;  %s4491_s11 = smov [#allocation2]  }
   0x2   :  { %s37_s10 = sshll.u32 %s4490_s30, 4  ;;  %s23_s12 = sshll.u32 %s4491_s11, 4  ;;  %s38_s10 = int_to_ptr.vmem [resolvable:$true] %s37_s10  ;;  %s4550_s12 = int_to_ptr.vmem [resolvable:$true] %s23_s12 }
   0x3   :  { %s4420_s15 = scalar_lea.hbm %s4694_s3, 16384 }
   0x4   :  { %p4421_p0 = scmp.ne.s32.totalorder %s4694_s3, %s4420_s15  ;;  %p4424_p1 = scmp.lt.u32.totalorder %s4420_s15, %s4694_s3 }
   0x6   :  { %p4426_p2 = pnand %p4424_p1, %p4421_p0 }
   0x8   :  { %4429 = shalt.err (!%p4426_p2)
}
   0x9   :  { %s4430_s20 = scalar_lea.vmem %s38_s10, 16384  ;;  %p4435_p4 = scmp.lt.s32.totalorder %s38_s10, %s38_s10 }
   0xa   :  { %p4431_p3 = scmp.ne.s32.totalorder %s38_s10, %s4430_s20  ;;  %p4436_p5 = scmp.lt.s32.totalorder %s4430_s20, %s4430_s20 }
   0xc   :  { %p4437_p6 = por %p4436_p5, %p4435_p4 }
   0xe   :  { %p4438_p7 = pnand %p4437_p6, %p4431_p3 }
  0x10   :  { %4441 = shalt.err (!%p4438_p7)
}
  0x11   :  { %s4492_s21 = smov 256   ;;  %s4493_s22 = smov 16  }
  0x12   :  { %43 = dma.hbm_to_vmem [thread:$0]  %s4694_s3, 16384, %s38_s10, [#allocation5], %s4492_s21, %s4492_s21, %s4493_s22  }
  0x13   :  { %s4442_s27 = scalar_lea.hbm %s4692_s1, 28672 }
  0x14   :  { %p4443_p8 = scmp.ne.s32.totalorder %s4692_s1, %s4442_s27  ;;  %p4446_p9 = scmp.lt.u32.totalorder %s4442_s27, %s4692_s1 }
  0x16   :  { %p4448_p10 = pnand %p4446_p9, %p4443_p8 }
  0x18   :  { %4451 = shalt.err (!%p4448_p10)
}
  0x19   :  { %s4452_s13 = scalar_lea.vmem %s4550_s12, 28672  ;;  %p4457_p12 = scmp.lt.s32.totalorder %s4550_s12, %s4550_s12 }
  0x1a   :  { %p4453_p11 = scmp.ne.s32.totalorder %s4550_s12, %s4452_s13  ;;  %p4458_p13 = scmp.lt.s32.totalorder %s4452_s13, %s4452_s13 }
  0x1c   :  { %p4459_p0 = por %p4458_p13, %p4457_p12 }
  0x1e   :  { %p4460_p1 = pnand %p4459_p0, %p4453_p11 }
  0x20   :  { %4463 = shalt.err (!%p4460_p1)
}
  0x21   :  { %29 = dma.hbm_to_vmem [thread:$0]  %s4692_s1, 28672, %s4550_s12, [#allocation3], %s4492_s21, %s4492_s21, %s4493_s22  }
  0x22   :  { %s4494_s14 = smov [#allocation6]   ;;  %s4464_s18 = scalar_lea.hbm %s4696_s5, 4096 }
  0x23   :  { %s51_s15 = sshll.u32 %s4494_s14, 4  ;;  %p4465_p2 = scmp.ne.s32.totalorder %s4696_s5, %s4464_s18  ;;  %s52_s15 = int_to_ptr.vmem [resolvable:$true] %s51_s15 }
  0x24   :  { %p4468_p3 = scmp.lt.u32.totalorder %s4464_s18, %s4696_s5 }
  0x26   :  { %p4470_p4 = pnand %p4468_p3, %p4465_p2 }
  0x28   :  { %4473 = shalt.err (!%p4470_p4)
}
  0x29   :  { %s4474_s25 = scalar_lea.vmem %s52_s15, 4096  ;;  %p4479_p6 = scmp.lt.s32.totalorder %s52_s15, %s52_s15 }
  0x2a   :  { %p4475_p5 = scmp.ne.s32.totalorder %s52_s15, %s4474_s25  ;;  %p4480_p7 = scmp.lt.s32.totalorder %s4474_s25, %s4474_s25 }
  0x2c   :  { %p4481_p8 = por %p4480_p7, %p4479_p6 }
  0x2e   :  { %p4482_p9 = pnand %p4481_p8, %p4475_p5 }
  0x30   :  { %4485 = shalt.err (!%p4482_p9)
}
  0x31   :  { %s4495_s1 = smov 64   ;;  %s4496_s12 = smov 4  }
  0x32   :  { %57 = dma.hbm_to_vmem [thread:$0]  %s4696_s5, 4096, %s52_s15, [#allocation5], %s4495_s1, %s4495_s1, %s4496_s12  }
  0x33   :  { %4486 = dma.done.wait [#allocation3], 28672  }
  0x34   :  { %4487 = vsyncadd [#allocation3], 4294938624 }
  0x35   :  { %4488 = dma.done.wait [#allocation5], 20480  }
  0x36   :  { %4489 = vsyncadd [#allocation5], 4294946816  ;;  %v3834_v0 = vld [vmem:[#allocation2 + $0x4] ss:$16 sps:$4 sm:$0xff]   ;;  %v3836_v1 = vld [vmem:[#allocation2 + $0xc] ss:$16 sps:$4 sm:$0xff]  }
  0x37   :  { %1484 = vmatprep.subr.bf16.mxu0 %v3834_v0  ;;  %v3838_v2 = vld [vmem:[#allocation2] ss:$16 sps:$4 sm:$0xff]   ;;  %v3839_v3 = vld [vmem:[#allocation2 + $0x8] ss:$16 sps:$4 sm:$0xff]   ;;  %1656 = vmatprep.subr.bf16.mxu1 %v3836_v1  ;;  %v3840_v4 = vld [vmem:[#allocation2 + $0x24] ss:$16 sps:$4 sm:$0xff]  }
  0x38   :  { %1485 = vmatpush1.bf16.msra.mxu0 %v3838_v2  ;;  %1657 = vmatpush1.bf16.msra.mxu1 %v3839_v3  ;;  %v3842_v5 = vld [vmem:[#allocation2 + $0x2c] ss:$16 sps:$4 sm:$0xff]   ;;  %v3844_v6 = vld [vmem:[#allocation2 + $0x20] ss:$16 sps:$4 sm:$0xff]   ;;  %v3845_v7 = vld [vmem:[#allocation2 + $0x28] ss:$16 sps:$4 sm:$0xff]  }
  0x39   :  { %1486 = vmatprep.subr.bf16.mxu0 %v3840_v4  ;;  %1658 = vmatprep.subr.bf16.mxu1 %v3842_v5  ;;  %v3846_v8 = vld [vmem:[#allocation2 + $0x44] ss:$16 sps:$4 sm:$0xff]   ;;  %v3848_v9 = vld [vmem:[#allocation2 + $0x4c] ss:$16 sps:$4 sm:$0xff]   ;;  %v3850_v10 = vld [vmem:[#allocation2 + $0x40] ss:$16 sps:$4 sm:$0xff]  }
  0x3a   :  { %v3851_v11 = vld [vmem:[#allocation2 + $0x48] ss:$16 sps:$4 sm:$0xff]   ;;  %v3852_v12 = vld [vmem:[#allocation2 + $0x64] ss:$16 sps:$4 sm:$0xff]   ;;  %v3854_v13 = vld [vmem:[#allocation2 + $0x6c] ss:$16 sps:$4 sm:$0xff]  }
  0x3b   :  { %v3856_v14 = vld [vmem:[#allocation2 + $0x60] ss:$16 sps:$4 sm:$0xff]   ;;  %v3857_v15 = vld [vmem:[#allocation2 + $0x68] ss:$16 sps:$4 sm:$0xff]   ;;  %v3858_v16 = vld [vmem:[#allocation2 + $0x84] ss:$16 sps:$4 sm:$0xff]  }
  0x3c   :  { %1487 = vmatpush1.bf16.msra.mxu0 %v3844_v6  ;;  %1659 = vmatpush1.bf16.msra.mxu1 %v3845_v7  ;;  %v3860_v17 = vld [vmem:[#allocation2 + $0x8c] ss:$16 sps:$4 sm:$0xff]   ;;  %v3862_v18 = vld [vmem:[#allocation2 + $0x80] ss:$16 sps:$4 sm:$0xff]   ;;  %v3863_v19 = vld [vmem:[#allocation2 + $0x88] ss:$16 sps:$4 sm:$0xff]  }
  0x3d   :  { %1488 = vmatprep.subr.bf16.mxu0 %v3846_v8  ;;  %1660 = vmatprep.subr.bf16.mxu1 %v3848_v9  ;;  %v3864_v20 = vld [vmem:[#allocation2 + $0xa4] ss:$16 sps:$4 sm:$0xff]   ;;  %v3866_v21 = vld [vmem:[#allocation2 + $0xac] ss:$16 sps:$4 sm:$0xff]   ;;  %v3868_v22 = vld [vmem:[#allocation2 + $0xa0] ss:$16 sps:$4 sm:$0xff]  }
  0x3e   :  { %v3869_v23 = vld [vmem:[#allocation2 + $0xa8] ss:$16 sps:$4 sm:$0xff]   ;;  %v3870_v24 = vld [vmem:[#allocation2 + $0xc4] ss:$16 sps:$4 sm:$0xff]   ;;  %v3872_v25 = vld [vmem:[#allocation2 + $0xcc] ss:$16 sps:$4 sm:$0xff]  }
  0x3f   :  { %v3874_v26 = vld [vmem:[#allocation2 + $0xc0] ss:$16 sps:$4 sm:$0xff]   ;;  %v3875_v27 = vld [vmem:[#allocation2 + $0xc8] ss:$16 sps:$4 sm:$0xff]   ;;  %v3876_v28 = vld [vmem:[#allocation2 + $0xe4] ss:$16 sps:$4 sm:$0xff]  }
  0x40   :  { %1489 = vmatpush1.bf16.msra.mxu0 %v3850_v10  ;;  %1661 = vmatpush1.bf16.msra.mxu1 %v3851_v11  ;;  %v3878_v29 = vld [vmem:[#allocation2 + $0xec] ss:$16 sps:$4 sm:$0xff]   ;;  %v3880_v30 = vld [vmem:[#allocation2 + $0xe0] ss:$16 sps:$4 sm:$0xff]   ;;  %v3881_v31 = vld [vmem:[#allocation2 + $0xe8] ss:$16 sps:$4 sm:$0xff]  }
  0x41   :  { %1490 = vmatprep.subr.bf16.mxu0 %v3852_v12  ;;  %1662 = vmatprep.subr.bf16.mxu1 %v3854_v13  ;;  %v3882_v32 = vld [vmem:[#allocation2 + $0x104] ss:$16 sps:$4 sm:$0xff]   ;;  %v3884_v33 = vld [vmem:[#allocation2 + $0x10c] ss:$16 sps:$4 sm:$0xff]   ;;  %v3886_v34 = vld [vmem:[#allocation2 + $0x100] ss:$16 sps:$4 sm:$0xff]  }
  0x42   :  { %v3887_v35 = vld [vmem:[#allocation2 + $0x108] ss:$16 sps:$4 sm:$0xff]   ;;  %v3888_v36 = vld [vmem:[#allocation2 + $0x124] ss:$16 sps:$4 sm:$0xff]   ;;  %v3890_v37 = vld [vmem:[#allocation2 + $0x12c] ss:$16 sps:$4 sm:$0xff]  }
  0x43   :  { %v3892_v38 = vld [vmem:[#allocation2 + $0x120] ss:$16 sps:$4 sm:$0xff]   ;;  %v3893_v39 = vld [vmem:[#allocation2 + $0x128] ss:$16 sps:$4 sm:$0xff]   ;;  %v3894_v40 = vld [vmem:[#allocation2 + $0x144] ss:$16 sps:$4 sm:$0xff]  }
  0x44   :  { %1491 = vmatpush1.bf16.msra.mxu0 %v3856_v14  ;;  %1663 = vmatpush1.bf16.msra.mxu1 %v3857_v15  ;;  %v3896_v41 = vld [vmem:[#allocation2 + $0x14c] ss:$16 sps:$4 sm:$0xff]   ;;  %v3898_v42 = vld [vmem:[#allocation2 + $0x140] ss:$16 sps:$4 sm:$0xff]   ;;  %v3899_v43 = vld [vmem:[#allocation2 + $0x148] ss:$16 sps:$4 sm:$0xff]  }
  0x45   :  { %1492 = vmatprep.subr.bf16.mxu0 %v3858_v16  ;;  %1664 = vmatprep.subr.bf16.mxu1 %v3860_v17  ;;  %v3900_v44 = vld [vmem:[#allocation2 + $0x164] ss:$16 sps:$4 sm:$0xff]   ;;  %v3902_v45 = vld [vmem:[#allocation2 + $0x16c] ss:$16 sps:$4 sm:$0xff]   ;;  %v3904_v46 = vld [vmem:[#allocation2 + $0x160] ss:$16 sps:$4 sm:$0xff]  }
  0x46   :  { %v3905_v47 = vld [vmem:[#allocation2 + $0x168] ss:$16 sps:$4 sm:$0xff]   ;;  %v3932_v48 = vld [vmem:[%s4691_s0 + $0x4] ss:$28 sps:$4 sm:$0xff]   ;;  %v3908_v50 = vld [vmem:[#allocation2 + $0x18c] ss:$16 sps:$4 sm:$0xff]  }
  0x47   :  { %v3906_v49 = vld [vmem:[#allocation2 + $0x184] ss:$16 sps:$4 sm:$0xff]   ;;  %1516 = vmatprep.mubr.bf16.mxu0 %v3932_v48  ;;  %1688 = vmatprep.mubr.bf16.mxu1 %v3932_v48  ;;  %v3910_v51 = vld [vmem:[#allocation2 + $0x180] ss:$16 sps:$4 sm:$0xff]   ;;  %v3911_v52 = vld [vmem:[#allocation2 + $0x188] ss:$16 sps:$4 sm:$0xff]  }
  0x48   :  { %1493 = vmatpush1.bf16.msra.mxu0 %v3862_v18  ;;  %1665 = vmatpush1.bf16.msra.mxu1 %v3863_v19  ;;  %v3912_v53 = vld [vmem:[#allocation2 + $0x1a4] ss:$16 sps:$4 sm:$0xff]   ;;  %v3914_v54 = vld [vmem:[#allocation2 + $0x1ac] ss:$16 sps:$4 sm:$0xff]   ;;  %v3916_v55 = vld [vmem:[#allocation2 + $0x1a0] ss:$16 sps:$4 sm:$0xff]  }
  0x49   :  { %1494 = vmatprep.subr.bf16.mxu0 %v3864_v20  ;;  %1666 = vmatprep.subr.bf16.mxu1 %v3866_v21  ;;  %v3917_v56 = vld [vmem:[#allocation2 + $0x1a8] ss:$16 sps:$4 sm:$0xff]   ;;  %v3918_v57 = vld [vmem:[#allocation2 + $0x1c4] ss:$16 sps:$4 sm:$0xff]   ;;  %v3920_v58 = vld [vmem:[#allocation2 + $0x1cc] ss:$16 sps:$4 sm:$0xff]  }
  0x4a   :  { %v3922_v59 = vld [vmem:[#allocation2 + $0x1c0] ss:$16 sps:$4 sm:$0xff]   ;;  %v3923_v60 = vld [vmem:[#allocation2 + $0x1c8] ss:$16 sps:$4 sm:$0xff]   ;;  %v3924_v61 = vld [vmem:[#allocation2 + $0x1e4] ss:$16 sps:$4 sm:$0xff]  }
  0x4b   :  { %v3926_v62 = vld [vmem:[#allocation2 + $0x1ec] ss:$16 sps:$4 sm:$0xff]   ;;  %v3928_v63 = vld [vmem:[#allocation2 + $0x1e0] ss:$16 sps:$4 sm:$0xff]   ;;  %v3929_v0 = vld [vmem:[#allocation2 + $0x1e8] ss:$16 sps:$4 sm:$0xff]  }
  0x4c   :  { %1495 = vmatpush1.bf16.msra.mxu0 %v3868_v22  ;;  %1667 = vmatpush1.bf16.msra.mxu1 %v3869_v23  ;;  %v3935_v1 = vld [vmem:[#allocation2 + $0x204] ss:$16 sps:$4 sm:$0xff]   ;;  %v3938_v2 = vld [vmem:[#allocation2 + $0x20c] ss:$16 sps:$4 sm:$0xff]   ;;  %v3933_v4 = vld [vmem:[#allocation2 + $0x200] ss:$16 sps:$4 sm:$0xff]  }
  0x4d   :  { %1496 = vmatprep.subr.bf16.mxu0 %v3870_v24  ;;  %1668 = vmatprep.subr.bf16.mxu1 %v3872_v25  ;;  %v3930_v3 = vld [vmem:[%s4691_s0] ss:$28 sps:$4 sm:$0xff]   ;;  %v3936_v5 = vld [vmem:[#allocation2 + $0x208] ss:$16 sps:$4 sm:$0xff]   ;;  %v3941_v6 = vld [vmem:[#allocation2 + $0x224] ss:$16 sps:$4 sm:$0xff]  }
  0x4e   :  { %v3944_v7 = vld [vmem:[#allocation2 + $0x22c] ss:$16 sps:$4 sm:$0xff]   ;;  %v3939_v8 = vld [vmem:[#allocation2 + $0x220] ss:$16 sps:$4 sm:$0xff]   ;;  %v3942_v9 = vld [vmem:[#allocation2 + $0x228] ss:$16 sps:$4 sm:$0xff]  }
  0x4f   :  { %v3947_v10 = vld [vmem:[#allocation2 + $0x244] ss:$16 sps:$4 sm:$0xff]   ;;  %v3950_v11 = vld [vmem:[#allocation2 + $0x24c] ss:$16 sps:$4 sm:$0xff]   ;;  %v3945_v12 = vld [vmem:[#allocation2 + $0x240] ss:$16 sps:$4 sm:$0xff]  }
  0x50   :  { %1497 = vmatpush1.bf16.msra.mxu0 %v3874_v26  ;;  %1669 = vmatpush1.bf16.msra.mxu1 %v3875_v27  ;;  %v3948_v13 = vld [vmem:[#allocation2 + $0x248] ss:$16 sps:$4 sm:$0xff]   ;;  %v3953_v14 = vld [vmem:[#allocation2 + $0x264] ss:$16 sps:$4 sm:$0xff]   ;;  %v3956_v15 = vld [vmem:[#allocation2 + $0x26c] ss:$16 sps:$4 sm:$0xff]  }
  0x51   :  { %1498 = vmatprep.subr.bf16.mxu0 %v3876_v28  ;;  %1670 = vmatprep.subr.bf16.mxu1 %v3878_v29  ;;  %v3951_v16 = vld [vmem:[#allocation2 + $0x260] ss:$16 sps:$4 sm:$0xff]   ;;  %v3954_v17 = vld [vmem:[#allocation2 + $0x268] ss:$16 sps:$4 sm:$0xff]   ;;  %v3959_v18 = vld [vmem:[#allocation2 + $0x284] ss:$16 sps:$4 sm:$0xff]  }
  0x52   :  { %v3962_v19 = vld [vmem:[#allocation2 + $0x28c] ss:$16 sps:$4 sm:$0xff]   ;;  %v3957_v20 = vld [vmem:[#allocation2 + $0x280] ss:$16 sps:$4 sm:$0xff]   ;;  %v3960_v21 = vld [vmem:[#allocation2 + $0x288] ss:$16 sps:$4 sm:$0xff]  }
  0x53   :  { %v3965_v22 = vld [vmem:[#allocation2 + $0x2a4] ss:$16 sps:$4 sm:$0xff]   ;;  %v3968_v23 = vld [vmem:[#allocation2 + $0x2ac] ss:$16 sps:$4 sm:$0xff]   ;;  %v3963_v24 = vld [vmem:[#allocation2 + $0x2a0] ss:$16 sps:$4 sm:$0xff]  }
  0x54   :  { %1499 = vmatpush1.bf16.msra.mxu0 %v3880_v30  ;;  %1671 = vmatpush1.bf16.msra.mxu1 %v3881_v31  ;;  %v3966_v25 = vld [vmem:[#allocation2 + $0x2a8] ss:$16 sps:$4 sm:$0xff]   ;;  %v3971_v26 = vld [vmem:[#allocation2 + $0x2c4] ss:$16 sps:$4 sm:$0xff]   ;;  %v3974_v27 = vld [vmem:[#allocation2 + $0x2cc] ss:$16 sps:$4 sm:$0xff]  }
  0x55   :  { %1500 = vmatprep.subr.bf16.mxu0 %v3882_v32  ;;  %1672 = vmatprep.subr.bf16.mxu1 %v3884_v33  ;;  %v3969_v28 = vld [vmem:[#allocation2 + $0x2c0] ss:$16 sps:$4 sm:$0xff]   ;;  %v3972_v29 = vld [vmem:[#allocation2 + $0x2c8] ss:$16 sps:$4 sm:$0xff]   ;;  %v3977_v31 = vld [vmem:[#allocation2 + $0x2e4] ss:$16 sps:$4 sm:$0xff]  }
  0x56   :  { %v4031_v30 = vld [vmem:[%s4691_s0 + $0xc] ss:$28 sps:$4 sm:$0xff]   ;;  %v3975_v33 = vld [vmem:[#allocation2 + $0x2e0] ss:$16 sps:$4 sm:$0xff]   ;;  %vm4499_vm0 = vmmov 0  }
  0x57   :  { %v3980_v32 = vld [vmem:[#allocation2 + $0x2ec] ss:$16 sps:$4 sm:$0xff]  }
  0x58   :  { %1501 = vmatpush1.bf16.msra.mxu0 %v3886_v34  ;;  %1673 = vmatpush1.bf16.msra.mxu1 %v3887_v35  ;;  %v3978_v34 = vld [vmem:[#allocation2 + $0x2e8] ss:$16 sps:$4 sm:$0xff]   ;;  %v3983_v35 = vld [vmem:[#allocation2 + $0x304] ss:$16 sps:$4 sm:$0xff]   ;;  %v4004_v48 = vld [vmem:[#allocation2 + $0x36c] ss:$16 sps:$4 sm:$0xff]  }
  0x59   :  { %1502 = vmatprep.subr.bf16.mxu0 %v3888_v36  ;;  %1674 = vmatprep.subr.bf16.mxu1 %v3890_v37  ;;  %v3986_v36 = vld [vmem:[#allocation2 + $0x30c] ss:$16 sps:$4 sm:$0xff]   ;;  %v3981_v37 = vld [vmem:[#allocation2 + $0x300] ss:$16 sps:$4 sm:$0xff]  }
  0x5c   :  { %1503 = vmatpush1.bf16.msra.mxu0 %v3892_v38  ;;  %1675 = vmatpush1.bf16.msra.mxu1 %v3893_v39  ;;  %v3984_v38 = vld [vmem:[#allocation2 + $0x308] ss:$16 sps:$4 sm:$0xff]   ;;  %v3989_v39 = vld [vmem:[#allocation2 + $0x324] ss:$16 sps:$4 sm:$0xff]  }
  0x5d   :  { %1504 = vmatprep.subr.bf16.mxu0 %v3894_v40  ;;  %1676 = vmatprep.subr.bf16.mxu1 %v3896_v41  ;;  %v3992_v40 = vld [vmem:[#allocation2 + $0x32c] ss:$16 sps:$4 sm:$0xff]   ;;  %v3987_v41 = vld [vmem:[#allocation2 + $0x320] ss:$16 sps:$4 sm:$0xff]  }
  0x60   :  { %1505 = vmatpush1.bf16.msra.mxu0 %v3898_v42  ;;  %1677 = vmatpush1.bf16.msra.mxu1 %v3899_v43  ;;  %v3990_v42 = vld [vmem:[#allocation2 + $0x328] ss:$16 sps:$4 sm:$0xff]   ;;  %v3995_v43 = vld [vmem:[#allocation2 + $0x344] ss:$16 sps:$4 sm:$0xff]  }
  0x61   :  { %1506 = vmatprep.subr.bf16.mxu0 %v3900_v44  ;;  %1678 = vmatprep.subr.bf16.mxu1 %v3902_v45  ;;  %v3998_v44 = vld [vmem:[#allocation2 + $0x34c] ss:$16 sps:$4 sm:$0xff]   ;;  %v3993_v45 = vld [vmem:[#allocation2 + $0x340] ss:$16 sps:$4 sm:$0xff]  }
  0x64   :  { %1507 = vmatpush1.bf16.msra.mxu0 %v3904_v46  ;;  %1679 = vmatpush1.bf16.msra.mxu1 %v3905_v47  ;;  %v3996_v46 = vld [vmem:[#allocation2 + $0x348] ss:$16 sps:$4 sm:$0xff]   ;;  %v4001_v47 = vld [vmem:[#allocation2 + $0x364] ss:$16 sps:$4 sm:$0xff]  }
  0x65   :  { %1508 = vmatprep.subr.bf16.mxu0 %v3906_v49  ;;  %1680 = vmatprep.subr.bf16.mxu1 %v3908_v50  ;;  %v3999_v49 = vld [vmem:[#allocation2 + $0x360] ss:$16 sps:$4 sm:$0xff]   ;;  %v4002_v50 = vld [vmem:[#allocation2 + $0x368] ss:$16 sps:$4 sm:$0xff]  }
  0x68   :  { %1509 = vmatpush1.bf16.msra.mxu0 %v3910_v51  ;;  %1681 = vmatpush1.bf16.msra.mxu1 %v3911_v52  ;;  %v4007_v51 = vld [vmem:[#allocation2 + $0x384] ss:$16 sps:$4 sm:$0xff]   ;;  %v4010_v52 = vld [vmem:[#allocation2 + $0x38c] ss:$16 sps:$4 sm:$0xff]  }
  0x69   :  { %1510 = vmatprep.subr.bf16.mxu0 %v3912_v53  ;;  %1682 = vmatprep.subr.bf16.mxu1 %v3914_v54  ;;  %v4005_v53 = vld [vmem:[#allocation2 + $0x380] ss:$16 sps:$4 sm:$0xff]   ;;  %v4008_v54 = vld [vmem:[#allocation2 + $0x388] ss:$16 sps:$4 sm:$0xff]  }
  0x6c   :  { %1511 = vmatpush1.bf16.msra.mxu0 %v3916_v55  ;;  %1683 = vmatpush1.bf16.msra.mxu1 %v3917_v56  ;;  %v4013_v55 = vld [vmem:[#allocation2 + $0x3a4] ss:$16 sps:$4 sm:$0xff]   ;;  %v4016_v56 = vld [vmem:[#allocation2 + $0x3ac] ss:$16 sps:$4 sm:$0xff]  }
  0x6d   :  { %1512 = vmatprep.subr.bf16.mxu0 %v3918_v57  ;;  %1684 = vmatprep.subr.bf16.mxu1 %v3920_v58  ;;  %v4011_v57 = vld [vmem:[#allocation2 + $0x3a0] ss:$16 sps:$4 sm:$0xff]   ;;  %v4014_v58 = vld [vmem:[#allocation2 + $0x3a8] ss:$16 sps:$4 sm:$0xff]  }
  0x70   :  { %1513 = vmatpush1.bf16.msra.mxu0 %v3922_v59  ;;  %1685 = vmatpush1.bf16.msra.mxu1 %v3923_v60  ;;  %v4019_v59 = vld [vmem:[#allocation2 + $0x3c4] ss:$16 sps:$4 sm:$0xff]   ;;  %v4022_v60 = vld [vmem:[#allocation2 + $0x3cc] ss:$16 sps:$4 sm:$0xff]  }
  0x71   :  { %1514 = vmatprep.subr.bf16.mxu0 %v3924_v61  ;;  %1686 = vmatprep.subr.bf16.mxu1 %v3926_v62  ;;  %v4017_v61 = vld [vmem:[#allocation2 + $0x3c0] ss:$16 sps:$4 sm:$0xff]   ;;  %v4020_v62 = vld [vmem:[#allocation2 + $0x3c8] ss:$16 sps:$4 sm:$0xff]  }
  0x74   :  { %1515 = vmatpush1.bf16.msra.mxu0 %v3928_v63  ;;  %1687 = vmatpush1.bf16.msra.mxu1 %v3929_v0  ;;  %v4025_v63 = vld [vmem:[#allocation2 + $0x3e4] ss:$16 sps:$4 sm:$0xff]   ;;  %v4028_v0 = vld [vmem:[#allocation2 + $0x3ec] ss:$16 sps:$4 sm:$0xff]  }
  0x75   :  { %1527 = vmatprep.subr.bf16.mxu0 %v3935_v1  ;;  %1699 = vmatprep.subr.bf16.mxu1 %v3938_v2  ;;  %v4023_v1 = vld [vmem:[#allocation2 + $0x3e0] ss:$16 sps:$4 sm:$0xff]   ;;  %v4026_v2 = vld [vmem:[#allocation2 + $0x3e8] ss:$16 sps:$4 sm:$0xff]  }
  0x77   :  { %1517 = vmatmul.mubr.bf16.vlgmr.msra.gmra.mrb[0].mxu0 %v3930_v3  ;;  %1689 = vmatmul.mubr.bf16.vlgmr.msra.gmra.mrb[0].mxu1 %v3930_v3  ;;  %v4034_v3 = vld [vmem:[#allocation2 + $0x404] ss:$16 sps:$4 sm:$0xff]  }
  0x78   :  { %1528 = vmatpush1.bf16.msra.mxu0 %v3933_v4  ;;  %1700 = vmatpush1.bf16.msra.mxu1 %v3936_v5  ;;  %v4037_v4 = vld [vmem:[#allocation2 + $0x40c] ss:$16 sps:$4 sm:$0xff]   ;;  %v4029_v5 = vld [vmem:[%s4691_s0 + $0x8] ss:$28 sps:$4 sm:$0xff]  }
  0x79   :  { %1529 = vmatprep.subr.bf16.mxu0 %v3941_v6  ;;  %1701 = vmatprep.subr.bf16.mxu1 %v3944_v7  ;;  %v4032_v6 = vld [vmem:[#allocation2 + $0x400] ss:$16 sps:$4 sm:$0xff]   ;;  %v4035_v7 = vld [vmem:[#allocation2 + $0x408] ss:$16 sps:$4 sm:$0xff]  }
  0x7a   :  { %1559 = vmatprep.mubr.bf16.mxu0 %v4031_v30  ;;  %1731 = vmatprep.mubr.bf16.mxu1 %v4031_v30  ;;  %v4073_v30 = vld [vmem:[#allocation2 + $0x4cc] ss:$16 sps:$4 sm:$0xff]  }
  0x7c   :  { %1530 = vmatpush1.bf16.msra.mxu0 %v3939_v8  ;;  %1702 = vmatpush1.bf16.msra.mxu1 %v3942_v9  ;;  %v4040_v8 = vld [vmem:[#allocation2 + $0x424] ss:$16 sps:$4 sm:$0xff]   ;;  %v4043_v9 = vld [vmem:[#allocation2 + $0x42c] ss:$16 sps:$4 sm:$0xff]  }
  0x7d   :  { %1531 = vmatprep.subr.bf16.mxu0 %v3947_v10  ;;  %1703 = vmatprep.subr.bf16.mxu1 %v3950_v11  ;;  %v4038_v10 = vld [vmem:[#allocation2 + $0x420] ss:$16 sps:$4 sm:$0xff]   ;;  %v4041_v11 = vld [vmem:[#allocation2 + $0x428] ss:$16 sps:$4 sm:$0xff]  }
  0x80   :  { %1532 = vmatpush1.bf16.msra.mxu0 %v3945_v12  ;;  %1704 = vmatpush1.bf16.msra.mxu1 %v3948_v13  ;;  %v4130_v12 = vld [vmem:[%s4691_s0 + $0x14] ss:$28 sps:$4 sm:$0xff]  }
  0x81   :  { %1533 = vmatprep.subr.bf16.mxu0 %v3953_v14  ;;  %1705 = vmatprep.subr.bf16.mxu1 %v3956_v15  ;;  %v4046_v13 = vld [vmem:[#allocation2 + $0x444] ss:$16 sps:$4 sm:$0xff]   ;;  %v4049_v14 = vld [vmem:[#allocation2 + $0x44c] ss:$16 sps:$4 sm:$0xff]   ;;  %v4044_v15 = vld [vmem:[#allocation2 + $0x440] ss:$16 sps:$4 sm:$0xff]  }
  0x84   :  { %1534 = vmatpush1.bf16.msra.mxu0 %v3951_v16  ;;  %1706 = vmatpush1.bf16.msra.mxu1 %v3954_v17  ;;  %v4047_v16 = vld [vmem:[#allocation2 + $0x448] ss:$16 sps:$4 sm:$0xff]   ;;  %v4052_v17 = vld [vmem:[#allocation2 + $0x464] ss:$16 sps:$4 sm:$0xff]  }
  0x85   :  { %1535 = vmatprep.subr.bf16.mxu0 %v3959_v18  ;;  %1707 = vmatprep.subr.bf16.mxu1 %v3962_v19  ;;  %v4055_v18 = vld [vmem:[#allocation2 + $0x46c] ss:$16 sps:$4 sm:$0xff]   ;;  %v4050_v19 = vld [vmem:[#allocation2 + $0x460] ss:$16 sps:$4 sm:$0xff]  }
  0x88   :  { %1536 = vmatpush1.bf16.msra.mxu0 %v3957_v20  ;;  %1708 = vmatpush1.bf16.msra.mxu1 %v3960_v21  ;;  %v4053_v20 = vld [vmem:[#allocation2 + $0x468] ss:$16 sps:$4 sm:$0xff]   ;;  %v4058_v21 = vld [vmem:[#allocation2 + $0x484] ss:$16 sps:$4 sm:$0xff]  }
  0x89   :  { %1537 = vmatprep.subr.bf16.mxu0 %v3965_v22  ;;  %1709 = vmatprep.subr.bf16.mxu1 %v3968_v23  ;;  %v4061_v22 = vld [vmem:[#allocation2 + $0x48c] ss:$16 sps:$4 sm:$0xff]   ;;  %v4056_v23 = vld [vmem:[#allocation2 + $0x480] ss:$16 sps:$4 sm:$0xff]  }
  0x8c   :  { %1538 = vmatpush1.bf16.msra.mxu0 %v3963_v24  ;;  %1710 = vmatpush1.bf16.msra.mxu1 %v3966_v25  ;;  %v4059_v24 = vld [vmem:[#allocation2 + $0x488] ss:$16 sps:$4 sm:$0xff]   ;;  %v4064_v25 = vld [vmem:[#allocation2 + $0x4a4] ss:$16 sps:$4 sm:$0xff]  }
  0x8d   :  { %1539 = vmatprep.subr.bf16.mxu0 %v3971_v26  ;;  %1711 = vmatprep.subr.bf16.mxu1 %v3974_v27  ;;  %v4067_v26 = vld [vmem:[#allocation2 + $0x4ac] ss:$16 sps:$4 sm:$0xff]   ;;  %v4062_v27 = vld [vmem:[#allocation2 + $0x4a0] ss:$16 sps:$4 sm:$0xff]  }
  0x90   :  { %1540 = vmatpush1.bf16.msra.mxu0 %v3969_v28  ;;  %1712 = vmatpush1.bf16.msra.mxu1 %v3972_v29  ;;  %v4065_v28 = vld [vmem:[#allocation2 + $0x4a8] ss:$16 sps:$4 sm:$0xff]   ;;  %v4070_v29 = vld [vmem:[#allocation2 + $0x4c4] ss:$16 sps:$4 sm:$0xff]  }
  0x91   :  { %1541 = vmatprep.subr.bf16.mxu0 %v3977_v31  ;;  %1713 = vmatprep.subr.bf16.mxu1 %v3980_v32  ;;  %v4068_v31 = vld [vmem:[#allocation2 + $0x4c0] ss:$16 sps:$4 sm:$0xff]   ;;  %v4071_v32 = vld [vmem:[#allocation2 + $0x4c8] ss:$16 sps:$4 sm:$0xff]  }
  0x94   :  { %1542 = vmatpush1.bf16.msra.mxu0 %v3975_v33  ;;  %1714 = vmatpush1.bf16.msra.mxu1 %v3978_v34  ;;  %v4076_v33 = vld [vmem:[#allocation2 + $0x4e4] ss:$16 sps:$4 sm:$0xff]   ;;  %v4079_v34 = vld [vmem:[#allocation2 + $0x4ec] ss:$16 sps:$4 sm:$0xff]  }
  0x95   :  { %1543 = vmatprep.subr.bf16.mxu0 %v3983_v35  ;;  %1715 = vmatprep.subr.bf16.mxu1 %v3986_v36  ;;  %v4074_v35 = vld [vmem:[#allocation2 + $0x4e0] ss:$16 sps:$4 sm:$0xff]   ;;  %v4077_v36 = vld [vmem:[#allocation2 + $0x4e8] ss:$16 sps:$4 sm:$0xff]  }
  0x98   :  { %1544 = vmatpush1.bf16.msra.mxu0 %v3981_v37  ;;  %1716 = vmatpush1.bf16.msra.mxu1 %v3984_v38  ;;  %v4082_v37 = vld [vmem:[#allocation2 + $0x504] ss:$16 sps:$4 sm:$0xff]   ;;  %v4085_v38 = vld [vmem:[#allocation2 + $0x50c] ss:$16 sps:$4 sm:$0xff]  }
  0x99   :  { %1545 = vmatprep.subr.bf16.mxu0 %v3989_v39  ;;  %1717 = vmatprep.subr.bf16.mxu1 %v3992_v40  ;;  %v4080_v39 = vld [vmem:[#allocation2 + $0x500] ss:$16 sps:$4 sm:$0xff]   ;;  %v4083_v40 = vld [vmem:[#allocation2 + $0x508] ss:$16 sps:$4 sm:$0xff]  }
  0x9c   :  { %1546 = vmatpush1.bf16.msra.mxu0 %v3987_v41  ;;  %1718 = vmatpush1.bf16.msra.mxu1 %v3990_v42  ;;  %v4088_v41 = vld [vmem:[#allocation2 + $0x524] ss:$16 sps:$4 sm:$0xff]   ;;  %v4091_v42 = vld [vmem:[#allocation2 + $0x52c] ss:$16 sps:$4 sm:$0xff]  }
  0x9d   :  { %1547 = vmatprep.subr.bf16.mxu0 %v3995_v43  ;;  %1719 = vmatprep.subr.bf16.mxu1 %v3998_v44  ;;  %v4086_v43 = vld [vmem:[#allocation2 + $0x520] ss:$16 sps:$4 sm:$0xff]   ;;  %v4089_v44 = vld [vmem:[#allocation2 + $0x528] ss:$16 sps:$4 sm:$0xff]  }
  0xa0   :  { %1548 = vmatpush1.bf16.msra.mxu0 %v3993_v45  ;;  %1720 = vmatpush1.bf16.msra.mxu1 %v3996_v46  ;;  %v4094_v45 = vld [vmem:[#allocation2 + $0x544] ss:$16 sps:$4 sm:$0xff]   ;;  %v4097_v46 = vld [vmem:[#allocation2 + $0x54c] ss:$16 sps:$4 sm:$0xff]  }
  0xa1   :  { %1549 = vmatprep.subr.bf16.mxu0 %v4001_v47  ;;  %1721 = vmatprep.subr.bf16.mxu1 %v4004_v48  ;;  %v4092_v47 = vld [vmem:[#allocation2 + $0x540] ss:$16 sps:$4 sm:$0xff]   ;;  %v4095_v48 = vld [vmem:[#allocation2 + $0x548] ss:$16 sps:$4 sm:$0xff]  }
  0xa4   :  { %1550 = vmatpush1.bf16.msra.mxu0 %v3999_v49  ;;  %1722 = vmatpush1.bf16.msra.mxu1 %v4002_v50  ;;  %v4100_v49 = vld [vmem:[#allocation2 + $0x564] ss:$16 sps:$4 sm:$0xff]   ;;  %v4103_v50 = vld [vmem:[#allocation2 + $0x56c] ss:$16 sps:$4 sm:$0xff]  }
  0xa5   :  { %1551 = vmatprep.subr.bf16.mxu0 %v4007_v51  ;;  %1723 = vmatprep.subr.bf16.mxu1 %v4010_v52  ;;  %v4098_v51 = vld [vmem:[#allocation2 + $0x560] ss:$16 sps:$4 sm:$0xff]   ;;  %v4101_v52 = vld [vmem:[#allocation2 + $0x568] ss:$16 sps:$4 sm:$0xff]  }
  0xa8   :  { %1552 = vmatpush1.bf16.msra.mxu0 %v4005_v53  ;;  %1724 = vmatpush1.bf16.msra.mxu1 %v4008_v54  ;;  %v4106_v53 = vld [vmem:[#allocation2 + $0x584] ss:$16 sps:$4 sm:$0xff]   ;;  %v4109_v54 = vld [vmem:[#allocation2 + $0x58c] ss:$16 sps:$4 sm:$0xff]  }
  0xa9   :  { %1553 = vmatprep.subr.bf16.mxu0 %v4013_v55  ;;  %1725 = vmatprep.subr.bf16.mxu1 %v4016_v56  ;;  %v4104_v55 = vld [vmem:[#allocation2 + $0x580] ss:$16 sps:$4 sm:$0xff]   ;;  %v4107_v56 = vld [vmem:[#allocation2 + $0x588] ss:$16 sps:$4 sm:$0xff]  }
  0xac   :  { %1554 = vmatpush1.bf16.msra.mxu0 %v4011_v57  ;;  %1726 = vmatpush1.bf16.msra.mxu1 %v4014_v58  ;;  %v4112_v57 = vld [vmem:[#allocation2 + $0x5a4] ss:$16 sps:$4 sm:$0xff]   ;;  %v4115_v58 = vld [vmem:[#allocation2 + $0x5ac] ss:$16 sps:$4 sm:$0xff]  }
  0xad   :  { %1555 = vmatprep.subr.bf16.mxu0 %v4019_v59  ;;  %1727 = vmatprep.subr.bf16.mxu1 %v4022_v60  ;;  %v4110_v59 = vld [vmem:[#allocation2 + $0x5a0] ss:$16 sps:$4 sm:$0xff]   ;;  %v4113_v60 = vld [vmem:[#allocation2 + $0x5a8] ss:$16 sps:$4 sm:$0xff]  }
  0xb0   :  { %1556 = vmatpush1.bf16.msra.mxu0 %v4017_v61  ;;  %1728 = vmatpush1.bf16.msra.mxu1 %v4020_v62  ;;  %v4118_v61 = vld [vmem:[#allocation2 + $0x5c4] ss:$16 sps:$4 sm:$0xff]   ;;  %v4121_v62 = vld [vmem:[#allocation2 + $0x5cc] ss:$16 sps:$4 sm:$0xff]  }
  0xb1   :  { %1557 = vmatprep.subr.bf16.mxu0 %v4025_v63  ;;  %1729 = vmatprep.subr.bf16.mxu1 %v4028_v0  ;;  %v4116_v63 = vld [vmem:[#allocation2 + $0x5c0] ss:$16 sps:$4 sm:$0xff]   ;;  %v4119_v0 = vld [vmem:[#allocation2 + $0x5c8] ss:$16 sps:$4 sm:$0xff]  }
  0xb4   :  { %1558 = vmatpush1.bf16.msra.mxu0 %v4023_v1  ;;  %1730 = vmatpush1.bf16.msra.mxu1 %v4026_v2  ;;  %v4124_v1 = vld [vmem:[#allocation2 + $0x5e4] ss:$16 sps:$4 sm:$0xff]   ;;  %v4127_v2 = vld [vmem:[#allocation2 + $0x5ec] ss:$16 sps:$4 sm:$0xff]  }
  0xb5   :  { %1570 = vmatprep.subr.bf16.mxu0 %v4034_v3  ;;  %1742 = vmatprep.subr.bf16.mxu1 %v4037_v4  ;;  %v4122_v3 = vld [vmem:[#allocation2 + $0x5e0] ss:$16 sps:$4 sm:$0xff]   ;;  %v4125_v4 = vld [vmem:[#allocation2 + $0x5e8] ss:$16 sps:$4 sm:$0xff]  }
  0xb7   :  { %1560 = vmatmul.mubr.bf16.vlgmr.msra.gmra.mrb[0].mxu0 %v4029_v5  ;;  %1732 = vmatmul.mubr.bf16.vlgmr.msra.gmra.mrb[0].mxu1 %v4029_v5  ;;  %v4133_v5 = vld [vmem:[#allocation2 + $0x604] ss:$16 sps:$4 sm:$0xff]  }
  0xb8   :  { %1571 = vmatpush1.bf16.msra.mxu0 %v4032_v6  ;;  %1743 = vmatpush1.bf16.msra.mxu1 %v4035_v7  ;;  %v4128_v6 = vld [vmem:[%s4691_s0 + $0x10] ss:$28 sps:$4 sm:$0xff]  }
  0xb9   :  { %1572 = vmatprep.subr.bf16.mxu0 %v4040_v8  ;;  %1744 = vmatprep.subr.bf16.mxu1 %v4043_v9  ;;  %v4136_v7 = vld [vmem:[#allocation2 + $0x60c] ss:$16 sps:$4 sm:$0xff]   ;;  %v4131_v8 = vld [vmem:[#allocation2 + $0x600] ss:$16 sps:$4 sm:$0xff]   ;;  %v4134_v9 = vld [vmem:[#allocation2 + $0x608] ss:$16 sps:$4 sm:$0xff]  }
  0xba   :  { %1602 = vmatprep.mubr.bf16.mxu0 %v4130_v12  ;;  %1774 = vmatprep.mubr.bf16.mxu1 %v4130_v12  ;;  %v4137_v12 = vld [vmem:[#allocation2 + $0x620] ss:$16 sps:$4 sm:$0xff]  }
  0xbc   :  { %1573 = vmatpush1.bf16.msra.mxu0 %v4038_v10  ;;  %1745 = vmatpush1.bf16.msra.mxu1 %v4041_v11  ;;  %v4139_v10 = vld [vmem:[#allocation2 + $0x624] ss:$16 sps:$4 sm:$0xff]   ;;  %v4142_v11 = vld [vmem:[#allocation2 + $0x62c] ss:$16 sps:$4 sm:$0xff]  }
  0xbd   :  { %1574 = vmatprep.subr.bf16.mxu0 %v4046_v13  ;;  %1746 = vmatprep.subr.bf16.mxu1 %v4049_v14  ;;  %v4140_v13 = vld [vmem:[#allocation2 + $0x628] ss:$16 sps:$4 sm:$0xff]   ;;  %v4145_v14 = vld [vmem:[#allocation2 + $0x644] ss:$16 sps:$4 sm:$0xff]  }
  0xc0   :  { %1575 = vmatpush1.bf16.msra.mxu0 %v4044_v15  ;;  %1747 = vmatpush1.bf16.msra.mxu1 %v4047_v16  ;;  %v4148_v15 = vld [vmem:[#allocation2 + $0x64c] ss:$16 sps:$4 sm:$0xff]   ;;  %v4143_v16 = vld [vmem:[#allocation2 + $0x640] ss:$16 sps:$4 sm:$0xff]  }
  0xc1   :  { %1576 = vmatprep.subr.bf16.mxu0 %v4052_v17  ;;  %1748 = vmatprep.subr.bf16.mxu1 %v4055_v18  ;;  %v4146_v17 = vld [vmem:[#allocation2 + $0x648] ss:$16 sps:$4 sm:$0xff]   ;;  %v4497_v18 = vmov 0  }
  0xc4   :  { %1577 = vmatpush1.bf16.msra.mxu0 %v4050_v19  ;;  %1749 = vmatpush1.bf16.msra.mxu1 %v4053_v20  ;;  %v4151_v19 = vld [vmem:[#allocation2 + $0x664] ss:$16 sps:$4 sm:$0xff]   ;;  %v4154_v20 = vld [vmem:[#allocation2 + $0x66c] ss:$16 sps:$4 sm:$0xff]  }
  0xc5   :  { %1578 = vmatprep.subr.bf16.mxu0 %v4058_v21  ;;  %1750 = vmatprep.subr.bf16.mxu1 %v4061_v22  ;;  %v4149_v21 = vld [vmem:[#allocation2 + $0x660] ss:$16 sps:$4 sm:$0xff]   ;;  %v4152_v22 = vld [vmem:[#allocation2 + $0x668] ss:$16 sps:$4 sm:$0xff]  }
  0xc8   :  { %1579 = vmatpush1.bf16.msra.mxu0 %v4056_v23  ;;  %1751 = vmatpush1.bf16.msra.mxu1 %v4059_v24  ;;  %v4157_v23 = vld [vmem:[#allocation2 + $0x684] ss:$16 sps:$4 sm:$0xff]   ;;  %v4160_v24 = vld [vmem:[#allocation2 + $0x68c] ss:$16 sps:$4 sm:$0xff]  }
  0xc9   :  { %1580 = vmatprep.subr.bf16.mxu0 %v4064_v25  ;;  %1752 = vmatprep.subr.bf16.mxu1 %v4067_v26  ;;  %v4155_v25 = vld [vmem:[#allocation2 + $0x680] ss:$16 sps:$4 sm:$0xff]   ;;  %v4158_v26 = vld [vmem:[#allocation2 + $0x688] ss:$16 sps:$4 sm:$0xff]  }
  0xcc   :  { %1581 = vmatpush1.bf16.msra.mxu0 %v4062_v27  ;;  %1753 = vmatpush1.bf16.msra.mxu1 %v4065_v28  ;;  %v4163_v27 = vld [vmem:[#allocation2 + $0x6a4] ss:$16 sps:$4 sm:$0xff]   ;;  %v4166_v28 = vld [vmem:[#allocation2 + $0x6ac] ss:$16 sps:$4 sm:$0xff]  }
  0xcd   :  { %1582 = vmatprep.subr.bf16.mxu0 %v4070_v29  ;;  %1754 = vmatprep.subr.bf16.mxu1 %v4073_v30  ;;  %v4161_v29 = vld [vmem:[#allocation2 + $0x6a0] ss:$16 sps:$4 sm:$0xff]   ;;  %v4164_v30 = vld [vmem:[#allocation2 + $0x6a8] ss:$16 sps:$4 sm:$0xff]  }
  0xd0   :  { %1583 = vmatpush1.bf16.msra.mxu0 %v4068_v31  ;;  %1755 = vmatpush1.bf16.msra.mxu1 %v4071_v32  ;;  %v4169_v31 = vld [vmem:[#allocation2 + $0x6c4] ss:$16 sps:$4 sm:$0xff]   ;;  %v4172_v32 = vld [vmem:[#allocation2 + $0x6cc] ss:$16 sps:$4 sm:$0xff]  }
  0xd1   :  { %1584 = vmatprep.subr.bf16.mxu0 %v4076_v33  ;;  %1756 = vmatprep.subr.bf16.mxu1 %v4079_v34  ;;  %v4167_v33 = vld [vmem:[#allocation2 + $0x6c0] ss:$16 sps:$4 sm:$0xff]   ;;  %v4170_v34 = vld [vmem:[#allocation2 + $0x6c8] ss:$16 sps:$4 sm:$0xff]  }
  0xd4   :  { %1585 = vmatpush1.bf16.msra.mxu0 %v4074_v35  ;;  %1757 = vmatpush1.bf16.msra.mxu1 %v4077_v36  ;;  %v4175_v35 = vld [vmem:[#allocation2 + $0x6e4] ss:$16 sps:$4 sm:$0xff]   ;;  %v4178_v36 = vld [vmem:[#allocation2 + $0x6ec] ss:$16 sps:$4 sm:$0xff]  }
  0xd5   :  { %1586 = vmatprep.subr.bf16.mxu0 %v4082_v37  ;;  %1758 = vmatprep.subr.bf16.mxu1 %v4085_v38  ;;  %v4173_v37 = vld [vmem:[#allocation2 + $0x6e0] ss:$16 sps:$4 sm:$0xff]   ;;  %v4176_v38 = vld [vmem:[#allocation2 + $0x6e8] ss:$16 sps:$4 sm:$0xff]  }
  0xd8   :  { %1587 = vmatpush1.bf16.msra.mxu0 %v4080_v39  ;;  %1759 = vmatpush1.bf16.msra.mxu1 %v4083_v40  ;;  %v4182_v39 = vld [vmem:[#allocation4 + $0x4] ss:$16 sps:$4 sm:$0xff]   ;;  %v4185_v40 = vld [vmem:[#allocation4 + $0xc] ss:$16 sps:$4 sm:$0xff]  }
  0xd9   :  { %1588 = vmatprep.subr.bf16.mxu0 %v4088_v41  ;;  %1760 = vmatprep.subr.bf16.mxu1 %v4091_v42  ;;  %v4179_v41 = vld [vmem:[%s4691_s0 + $0x18] ss:$28 sps:$4 sm:$0xff]   ;;  %v4180_v42 = vld [vmem:[#allocation4] ss:$16 sps:$4 sm:$0xff]  }
  0xdc   :  { %1589 = vmatpush1.bf16.msra.mxu0 %v4086_v43  ;;  %1761 = vmatpush1.bf16.msra.mxu1 %v4089_v44  ;;  %v4183_v43 = vld [vmem:[#allocation4 + $0x8] ss:$16 sps:$4 sm:$0xff]   ;;  %v4188_v44 = vld [vmem:[#allocation4 + $0x24] ss:$16 sps:$4 sm:$0xff]  }
  0xdd   :  { %1590 = vmatprep.subr.bf16.mxu0 %v4094_v45  ;;  %1762 = vmatprep.subr.bf16.mxu1 %v4097_v46  ;;  %v4191_v45 = vld [vmem:[#allocation4 + $0x2c] ss:$16 sps:$4 sm:$0xff]   ;;  %v4186_v46 = vld [vmem:[#allocation4 + $0x20] ss:$16 sps:$4 sm:$0xff]  }
  0xe0   :  { %1591 = vmatpush1.bf16.msra.mxu0 %v4092_v47  ;;  %1763 = vmatpush1.bf16.msra.mxu1 %v4095_v48  ;;  %v4189_v47 = vld [vmem:[#allocation4 + $0x28] ss:$16 sps:$4 sm:$0xff]   ;;  %v4194_v48 = vld [vmem:[#allocation4 + $0x44] ss:$16 sps:$4 sm:$0xff]  }
  0xe1   :  { %1592 = vmatprep.subr.bf16.mxu0 %v4100_v49  ;;  %1764 = vmatprep.subr.bf16.mxu1 %v4103_v50  ;;  %v4197_v49 = vld [vmem:[#allocation4 + $0x4c] ss:$16 sps:$4 sm:$0xff]   ;;  %v4192_v50 = vld [vmem:[#allocation4 + $0x40] ss:$16 sps:$4 sm:$0xff]  }
  0xe4   :  { %1593 = vmatpush1.bf16.msra.mxu0 %v4098_v51  ;;  %1765 = vmatpush1.bf16.msra.mxu1 %v4101_v52  ;;  %v4195_v51 = vld [vmem:[#allocation4 + $0x48] ss:$16 sps:$4 sm:$0xff]   ;;  %v4200_v52 = vld [vmem:[#allocation4 + $0x64] ss:$16 sps:$4 sm:$0xff]  }
  0xe5   :  { %1594 = vmatprep.subr.bf16.mxu0 %v4106_v53  ;;  %1766 = vmatprep.subr.bf16.mxu1 %v4109_v54  ;;  %v4203_v53 = vld [vmem:[#allocation4 + $0x6c] ss:$16 sps:$4 sm:$0xff]   ;;  %v4198_v54 = vld [vmem:[#allocation4 + $0x60] ss:$16 sps:$4 sm:$0xff]  }
  0xe8   :  { %1595 = vmatpush1.bf16.msra.mxu0 %v4104_v55  ;;  %1767 = vmatpush1.bf16.msra.mxu1 %v4107_v56  ;;  %v4201_v55 = vld [vmem:[#allocation4 + $0x68] ss:$16 sps:$4 sm:$0xff]   ;;  %v4206_v56 = vld [vmem:[#allocation4 + $0x84] ss:$16 sps:$4 sm:$0xff]  }
  0xe9   :  { %1596 = vmatprep.subr.bf16.mxu0 %v4112_v57  ;;  %1768 = vmatprep.subr.bf16.mxu1 %v4115_v58  ;;  %v4209_v57 = vld [vmem:[#allocation4 + $0x8c] ss:$16 sps:$4 sm:$0xff]   ;;  %v4204_v58 = vld [vmem:[#allocation4 + $0x80] ss:$16 sps:$4 sm:$0xff]  }
  0xec   :  { %1597 = vmatpush1.bf16.msra.mxu0 %v4110_v59  ;;  %1769 = vmatpush1.bf16.msra.mxu1 %v4113_v60  ;;  %v4207_v59 = vld [vmem:[#allocation4 + $0x88] ss:$16 sps:$4 sm:$0xff]   ;;  %v4212_v60 = vld [vmem:[#allocation4 + $0xa4] ss:$16 sps:$4 sm:$0xff]  }
  0xed   :  { %1598 = vmatprep.subr.bf16.mxu0 %v4118_v61  ;;  %1770 = vmatprep.subr.bf16.mxu1 %v4121_v62  ;;  %v4215_v61 = vld [vmem:[#allocation4 + $0xac] ss:$16 sps:$4 sm:$0xff]   ;;  %v4210_v62 = vld [vmem:[#allocation4 + $0xa0] ss:$16 sps:$4 sm:$0xff]  }
  0xf0   :  { %1599 = vmatpush1.bf16.msra.mxu0 %v4116_v63  ;;  %1771 = vmatpush1.bf16.msra.mxu1 %v4119_v0  ;;  %v4213_v63 = vld [vmem:[#allocation4 + $0xa8] ss:$16 sps:$4 sm:$0xff]   ;;  %v4218_v0 = vld [vmem:[#allocation4 + $0xc4] ss:$16 sps:$4 sm:$0xff]  }
  0xf1   :  { %1600 = vmatprep.subr.bf16.mxu0 %v4124_v1  ;;  %1772 = vmatprep.subr.bf16.mxu1 %v4127_v2  ;;  %v4221_v1 = vld [vmem:[#allocation4 + $0xcc] ss:$16 sps:$4 sm:$0xff]   ;;  %v4216_v2 = vld [vmem:[#allocation4 + $0xc0] ss:$16 sps:$4 sm:$0xff]  }
  0xf4   :  { %1601 = vmatpush1.bf16.msra.mxu0 %v4122_v3  ;;  %1773 = vmatpush1.bf16.msra.mxu1 %v4125_v4  ;;  %v4219_v3 = vld [vmem:[#allocation4 + $0xc8] ss:$16 sps:$4 sm:$0xff]   ;;  %v4224_v4 = vld [vmem:[#allocation4 + $0xe4] ss:$16 sps:$4 sm:$0xff]  }
  0xf5   :  { %1613 = vmatprep.subr.bf16.mxu0 %v4133_v5  ;;  %1785 = vmatprep.subr.bf16.mxu1 %v4136_v7  ;;  %v4227_v5 = vld [vmem:[#allocation4 + $0xec] ss:$16 sps:$4 sm:$0xff]   ;;  %v4225_v7 = vld [vmem:[#allocation4 + $0xe8] ss:$16 sps:$4 sm:$0xff]  }
  0xf7   :  { %1603 = vmatmul.mubr.bf16.vlgmr.msra.gmra.mrb[0].mxu0 %v4128_v6  ;;  %1775 = vmatmul.mubr.bf16.vlgmr.msra.gmra.mrb[0].mxu1 %v4128_v6  ;;  %v4222_v6 = vld [vmem:[#allocation4 + $0xe0] ss:$16 sps:$4 sm:$0xff]  }
  0xf8   :  { %1614 = vmatpush1.bf16.msra.mxu0 %v4131_v8  ;;  %1786 = vmatpush1.bf16.msra.mxu1 %v4134_v9  ;;  %v4230_v8 = vld [vmem:[#allocation4 + $0x104] ss:$16 sps:$4 sm:$0xff]   ;;  %v4233_v9 = vld [vmem:[#allocation4 + $0x10c] ss:$16 sps:$4 sm:$0xff]  }
  0xf9   :  { %1615 = vmatprep.subr.bf16.mxu0 %v4139_v10  ;;  %1787 = vmatprep.subr.bf16.mxu1 %v4142_v11  ;;  %v4228_v10 = vld [vmem:[#allocation4 + $0x100] ss:$16 sps:$4 sm:$0xff]   ;;  %v4231_v11 = vld [vmem:[#allocation4 + $0x108] ss:$16 sps:$4 sm:$0xff]  }
  0xfa   :  { %1645 = vmatprep.mubr.bf16.mxu0 %v4497_v18  ;;  %1817 = vmatprep.mubr.bf16.mxu1 %v4497_v18  ;;  %v4240_v18 = vld [vmem:[#allocation4 + $0x140] ss:$16 sps:$4 sm:$0xff]  }
  0xfc   :  { %1616 = vmatpush1.bf16.msra.mxu0 %v4137_v12  ;;  %1788 = vmatpush1.bf16.msra.mxu1 %v4140_v13  ;;  %v4236_v12 = vld [vmem:[#allocation4 + $0x124] ss:$16 sps:$4 sm:$0xff]   ;;  %v4239_v13 = vld [vmem:[#allocation4 + $0x12c] ss:$16 sps:$4 sm:$0xff]  }
  0xfd   :  { %1617 = vmatprep.subr.bf16.mxu0 %v4145_v14  ;;  %1789 = vmatprep.subr.bf16.mxu1 %v4148_v15  ;;  %v4234_v14 = vld [vmem:[#allocation4 + $0x120] ss:$16 sps:$4 sm:$0xff]   ;;  %v4237_v15 = vld [vmem:[#allocation4 + $0x128] ss:$16 sps:$4 sm:$0xff]  }
 0x100   :  { %1618 = vmatpush1.bf16.msra.mxu0 %v4143_v16  ;;  %1790 = vmatpush1.bf16.msra.mxu1 %v4146_v17  ;;  %v4242_v16 = vld [vmem:[#allocation4 + $0x144] ss:$16 sps:$4 sm:$0xff]   ;;  %v4245_v17 = vld [vmem:[#allocation4 + $0x14c] ss:$16 sps:$4 sm:$0xff]  }
 0x101   :  { %1619 = vmatprep.subr.bf16.mxu0 %v4151_v19  ;;  %1791 = vmatprep.subr.bf16.mxu1 %v4154_v20  ;;  %v4243_v19 = vld [vmem:[#allocation4 + $0x148] ss:$16 sps:$4 sm:$0xff]   ;;  %v4248_v20 = vld [vmem:[#allocation4 + $0x164] ss:$16 sps:$4 sm:$0xff]  }
 0x104   :  { %1620 = vmatpush1.bf16.msra.mxu0 %v4149_v21  ;;  %1792 = vmatpush1.bf16.msra.mxu1 %v4152_v22  ;;  %v4251_v21 = vld [vmem:[#allocation4 + $0x16c] ss:$16 sps:$4 sm:$0xff]   ;;  %v4246_v22 = vld [vmem:[#allocation4 + $0x160] ss:$16 sps:$4 sm:$0xff]  }
 0x105   :  { %1621 = vmatprep.subr.bf16.mxu0 %v4157_v23  ;;  %1793 = vmatprep.subr.bf16.mxu1 %v4160_v24  ;;  %v4249_v23 = vld [vmem:[#allocation4 + $0x168] ss:$16 sps:$4 sm:$0xff]   ;;  %v4254_v24 = vld [vmem:[#allocation4 + $0x184] ss:$16 sps:$4 sm:$0xff]  }
 0x108   :  { %1622 = vmatpush1.bf16.msra.mxu0 %v4155_v25  ;;  %1794 = vmatpush1.bf16.msra.mxu1 %v4158_v26  ;;  %v4257_v25 = vld [vmem:[#allocation4 + $0x18c] ss:$16 sps:$4 sm:$0xff]   ;;  %v4252_v26 = vld [vmem:[#allocation4 + $0x180] ss:$16 sps:$4 sm:$0xff]  }
 0x109   :  { %1623 = vmatprep.subr.bf16.mxu0 %v4163_v27  ;;  %1795 = vmatprep.subr.bf16.mxu1 %v4166_v28  ;;  %v4255_v27 = vld [vmem:[#allocation4 + $0x188] ss:$16 sps:$4 sm:$0xff]   ;;  %v4260_v28 = vld [vmem:[#allocation4 + $0x1a4] ss:$16 sps:$4 sm:$0xff]  }
 0x10c   :  { %1624 = vmatpush1.bf16.msra.mxu0 %v4161_v29  ;;  %1796 = vmatpush1.bf16.msra.mxu1 %v4164_v30  ;;  %v4263_v29 = vld [vmem:[#allocation4 + $0x1ac] ss:$16 sps:$4 sm:$0xff]   ;;  %v4258_v30 = vld [vmem:[#allocation4 + $0x1a0] ss:$16 sps:$4 sm:$0xff]  }
 0x10d   :  { %1625 = vmatprep.subr.bf16.mxu0 %v4169_v31  ;;  %1797 = vmatprep.subr.bf16.mxu1 %v4172_v32  ;;  %v4261_v31 = vld [vmem:[#allocation4 + $0x1a8] ss:$16 sps:$4 sm:$0xff]   ;;  %v4266_v32 = vld [vmem:[#allocation4 + $0x1c4] ss:$16 sps:$4 sm:$0xff]  }
 0x110   :  { %1626 = vmatpush1.bf16.msra.mxu0 %v4167_v33  ;;  %1798 = vmatpush1.bf16.msra.mxu1 %v4170_v34  ;;  %v4269_v33 = vld [vmem:[#allocation4 + $0x1cc] ss:$16 sps:$4 sm:$0xff]   ;;  %v4264_v34 = vld [vmem:[#allocation4 + $0x1c0] ss:$16 sps:$4 sm:$0xff]  }
 0x111   :  { %1627 = vmatprep.subr.bf16.mxu0 %v4175_v35  ;;  %1799 = vmatprep.subr.bf16.mxu1 %v4178_v36  ;;  %v4267_v35 = vld [vmem:[#allocation4 + $0x1c8] ss:$16 sps:$4 sm:$0xff]   ;;  %v4272_v36 = vld [vmem:[#allocation4 + $0x1e4] ss:$16 sps:$4 sm:$0xff]  }
 0x114   :  { %1628 = vmatpush1.bf16.msra.mxu0 %v4173_v37  ;;  %1800 = vmatpush1.bf16.msra.mxu1 %v4176_v38  ;;  %v4275_v37 = vld [vmem:[#allocation4 + $0x1ec] ss:$16 sps:$4 sm:$0xff]   ;;  %v4270_v38 = vld [vmem:[#allocation4 + $0x1e0] ss:$16 sps:$4 sm:$0xff]  }
 0x115   :  { %2630 = vmatprep.subr.bf16.mxu0 %v4182_v39  ;;  %2716 = vmatprep.subr.bf16.mxu1 %v4185_v40  ;;  %v4273_v39 = vld [vmem:[#allocation4 + $0x1e8] ss:$16 sps:$4 sm:$0xff]   ;;  %v4278_v40 = vld [vmem:[#allocation4 + $0x204] ss:$16 sps:$4 sm:$0xff]  }
 0x117   :  { %1646 = vmatmul.mubr.bf16.vlgmr.msra.gmra.mrb[0].mxu0 %v4179_v41  ;;  %1818 = vmatmul.mubr.bf16.vlgmr.msra.gmra.mrb[0].mxu1 %v4179_v41  ;;  %v4281_v41 = vld [vmem:[#allocation4 + $0x20c] ss:$16 sps:$4 sm:$0xff]  }
 0x118   :  { %2631 = vmatpush1.bf16.msra.mxu0 %v4180_v42  ;;  %2717 = vmatpush1.bf16.msra.mxu1 %v4183_v43  ;;  %v308_v42 = vlaneseq }
 0x119   :  { %2632 = vmatprep.subr.bf16.mxu0 %v4188_v44  ;;  %2718 = vmatprep.subr.bf16.mxu1 %v4191_v45 }
 0x11a   :  { %v4614_v43 = vshrl.u32 %v308_v42, 7  ;;  %v4315_v42 = vld [vmem:[#allocation4 + $0x2c8] ss:$16 sps:$4 sm:$0xff]  }
 0x11c   :  { %2633 = vmatpush1.bf16.msra.mxu0 %v4186_v46  ;;  %2719 = vmatpush1.bf16.msra.mxu1 %v4189_v47  ;;  %v310_v44 = vsub.s32 0, %v4614_v43  ;;  %v318_v45 = vsub.s32 2, %v4614_v43  ;;  %v306_v46 = vld [vmem:[%s4693_s2] sm:$0xf]  ;;  %v314_v47 = vsub.s32 1, %v4614_v43 }
 0x11d   :  { %2634 = vmatprep.subr.bf16.mxu0 %v4194_v48  ;;  %2720 = vmatprep.subr.bf16.mxu1 %v4197_v49  ;;  %v322_v48 = vsub.s32 3, %v4614_v43 }
 0x11e   :  { %v311_v49 = vrot.slane %v306_v46, %v310_v44 }
 0x120   :  { %2635 = vmatpush1.bf16.msra.mxu0 %v4192_v50  ;;  %2721 = vmatpush1.bf16.msra.mxu1 %v4195_v51  ;;  %v319_v50 = vrot.slane %v306_v46, %v318_v45  ;;  %v315_v51 = vrot.slane %v306_v46, %v314_v47 }
 0x121   :  { %2636 = vmatprep.subr.bf16.mxu0 %v4200_v52  ;;  %2722 = vmatprep.subr.bf16.mxu1 %v4203_v53  ;;  %v323_v52 = vrot.slane %v306_v46, %v322_v48  ;;  %v4320_v46 = vld [vmem:[#allocation4 + $0x2e4] ss:$16 sps:$4 sm:$0xff]  }
 0x124   :  { %2637 = vmatpush1.bf16.msra.mxu0 %v4198_v54  ;;  %2723 = vmatpush1.bf16.msra.mxu1 %v4201_v55 }
 0x125   :  { %2638 = vmatprep.subr.bf16.mxu0 %v4206_v56  ;;  %2724 = vmatprep.subr.bf16.mxu1 %v4209_v57 }
 0x128   :  { %2639 = vmatpush1.bf16.msra.mxu0 %v4204_v58  ;;  %2725 = vmatpush1.bf16.msra.mxu1 %v4207_v59 }
 0x129   :  { %2640 = vmatprep.subr.bf16.mxu0 %v4212_v60  ;;  %2726 = vmatprep.subr.bf16.mxu1 %v4215_v61 }
 0x12c   :  { %2641 = vmatpush1.bf16.msra.mxu0 %v4210_v62  ;;  %2727 = vmatpush1.bf16.msra.mxu1 %v4213_v63 }
 0x12d   :  { %2642 = vmatprep.subr.bf16.mxu0 %v4218_v0  ;;  %2728 = vmatprep.subr.bf16.mxu1 %v4221_v1 }
 0x130   :  { %2643 = vmatpush1.bf16.msra.mxu0 %v4216_v2  ;;  %2729 = vmatpush1.bf16.msra.mxu1 %v4219_v3 }
 0x131   :  { %2644 = vmatprep.subr.bf16.mxu0 %v4224_v4  ;;  %2730 = vmatprep.subr.bf16.mxu1 %v4227_v5 }
 0x134   :  { %2645 = vmatpush1.bf16.msra.mxu0 %v4222_v6  ;;  %2731 = vmatpush1.bf16.msra.mxu1 %v4225_v7 }
 0x135   :  { %2646 = vmatprep.subr.bf16.mxu0 %v4230_v8  ;;  %2732 = vmatprep.subr.bf16.mxu1 %v4233_v9 }
 0x138   :  { %2647 = vmatpush1.bf16.msra.mxu0 %v4228_v10  ;;  %2733 = vmatpush1.bf16.msra.mxu1 %v4231_v11 }
 0x139   :  { %2648 = vmatprep.subr.bf16.mxu0 %v4236_v12  ;;  %2734 = vmatprep.subr.bf16.mxu1 %v4239_v13 }
 0x13c   :  { %2649 = vmatpush1.bf16.msra.mxu0 %v4234_v14  ;;  %2735 = vmatpush1.bf16.msra.mxu1 %v4237_v15 }
 0x13d   :  { %2650 = vmatprep.subr.bf16.mxu0 %v4242_v16  ;;  %2736 = vmatprep.subr.bf16.mxu1 %v4245_v17  ;;  %v4276_v17 = vld [vmem:[#allocation4 + $0x200] ss:$16 sps:$4 sm:$0xff]  }
 0x140   :  { %2651 = vmatpush1.bf16.msra.mxu0 %v4240_v18  ;;  %2737 = vmatpush1.bf16.msra.mxu1 %v4243_v19  ;;  %v4279_v18 = vld [vmem:[#allocation4 + $0x208] ss:$16 sps:$4 sm:$0xff]   ;;  %v4284_v19 = vld [vmem:[#allocation4 + $0x224] ss:$16 sps:$4 sm:$0xff]  }
 0x141   :  { %2652 = vmatprep.subr.bf16.mxu0 %v4248_v20  ;;  %2738 = vmatprep.subr.bf16.mxu1 %v4251_v21  ;;  %v4287_v20 = vld [vmem:[#allocation4 + $0x22c] ss:$16 sps:$4 sm:$0xff]   ;;  %v4282_v21 = vld [vmem:[#allocation4 + $0x220] ss:$16 sps:$4 sm:$0xff]  }
 0x144   :  { %2653 = vmatpush1.bf16.msra.mxu0 %v4246_v22  ;;  %2739 = vmatpush1.bf16.msra.mxu1 %v4249_v23  ;;  %v4285_v22 = vld [vmem:[#allocation4 + $0x228] ss:$16 sps:$4 sm:$0xff]   ;;  %v4290_v23 = vld [vmem:[#allocation4 + $0x244] ss:$16 sps:$4 sm:$0xff]  }
 0x145   :  { %2654 = vmatprep.subr.bf16.mxu0 %v4254_v24  ;;  %2740 = vmatprep.subr.bf16.mxu1 %v4257_v25  ;;  %v4293_v24 = vld [vmem:[#allocation4 + $0x24c] ss:$16 sps:$4 sm:$0xff]   ;;  %v4288_v25 = vld [vmem:[#allocation4 + $0x240] ss:$16 sps:$4 sm:$0xff]  }
 0x148   :  { %2655 = vmatpush1.bf16.msra.mxu0 %v4252_v26  ;;  %2741 = vmatpush1.bf16.msra.mxu1 %v4255_v27  ;;  %v4291_v26 = vld [vmem:[#allocation4 + $0x248] ss:$16 sps:$4 sm:$0xff]   ;;  %v4296_v27 = vld [vmem:[#allocation4 + $0x264] ss:$16 sps:$4 sm:$0xff]  }
 0x149   :  { %2656 = vmatprep.subr.bf16.mxu0 %v4260_v28  ;;  %2742 = vmatprep.subr.bf16.mxu1 %v4263_v29  ;;  %v4299_v28 = vld [vmem:[#allocation4 + $0x26c] ss:$16 sps:$4 sm:$0xff]   ;;  %v4294_v29 = vld [vmem:[#allocation4 + $0x260] ss:$16 sps:$4 sm:$0xff]  }
 0x14c   :  { %2657 = vmatpush1.bf16.msra.mxu0 %v4258_v30  ;;  %2743 = vmatpush1.bf16.msra.mxu1 %v4261_v31  ;;  %v4297_v30 = vld [vmem:[#allocation4 + $0x268] ss:$16 sps:$4 sm:$0xff]   ;;  %v4302_v31 = vld [vmem:[#allocation4 + $0x284] ss:$16 sps:$4 sm:$0xff]  }
 0x14d   :  { %2658 = vmatprep.subr.bf16.mxu0 %v4266_v32  ;;  %2744 = vmatprep.subr.bf16.mxu1 %v4269_v33  ;;  %v4305_v32 = vld [vmem:[#allocation4 + $0x28c] ss:$16 sps:$4 sm:$0xff]   ;;  %v4300_v33 = vld [vmem:[#allocation4 + $0x280] ss:$16 sps:$4 sm:$0xff]  }
 0x150   :  { %2659 = vmatpush1.bf16.msra.mxu0 %v4264_v34  ;;  %2745 = vmatpush1.bf16.msra.mxu1 %v4267_v35  ;;  %v4303_v34 = vld [vmem:[#allocation4 + $0x288] ss:$16 sps:$4 sm:$0xff]   ;;  %v4308_v35 = vld [vmem:[#allocation4 + $0x2a4] ss:$16 sps:$4 sm:$0xff]  }
 0x151   :  { %2660 = vmatprep.subr.bf16.mxu0 %v4272_v36  ;;  %2746 = vmatprep.subr.bf16.mxu1 %v4275_v37  ;;  %v4311_v36 = vld [vmem:[#allocation4 + $0x2ac] ss:$16 sps:$4 sm:$0xff]   ;;  %v4306_v37 = vld [vmem:[#allocation4 + $0x2a0] ss:$16 sps:$4 sm:$0xff]  }
 0x154   :  { %2661 = vmatpush1.bf16.msra.mxu0 %v4270_v38  ;;  %2747 = vmatpush1.bf16.msra.mxu1 %v4273_v39  ;;  %v4309_v38 = vld [vmem:[#allocation4 + $0x2a8] ss:$16 sps:$4 sm:$0xff]   ;;  %v4314_v39 = vld [vmem:[#allocation4 + $0x2c4] ss:$16 sps:$4 sm:$0xff]  }
 0x155   :  { %2673 = vmatprep.subr.bf16.mxu0 %v4278_v40  ;;  %2759 = vmatprep.subr.bf16.mxu1 %v4281_v41  ;;  %v4317_v40 = vld [vmem:[#allocation4 + $0x2cc] ss:$16 sps:$4 sm:$0xff]   ;;  %v4312_v41 = vld [vmem:[#allocation4 + $0x2c0] ss:$16 sps:$4 sm:$0xff]  }
 0x1ea   :  { %v1647_v53 = vpop.f32.mrb[0].mxu0  ;;  %v1819_v54 = vpop.f32.mrb[0].mxu1 }
 0x1eb   :  { %v3776_v55 = vadd.f32 %v1647_v53, %v311_v49  ;;  %v3780_v56 = vadd.f32 %v1819_v54, %v319_v50  ;;  %v1649_v57 = vpop.f32.mrb[1].mxu0  ;;  %v1821_v58 = vpop.f32.mrb[1].mxu1  ;;  %v4329_v53 = vld [vmem:[#allocation4 + $0x30c] ss:$16 sps:$4 sm:$0xff]   ;;  %v4324_v54 = vld [vmem:[#allocation4 + $0x300] ss:$16 sps:$4 sm:$0xff]  }
 0x1ec   :  { %v3777_v59 = vadd.f32 %v1649_v57, %v315_v51  ;;  %v3781_v60 = vadd.f32 %v1821_v58, %v323_v52  ;;  %v1651_v61 = vpop.f32.mrb[2].mxu0  ;;  %v1823_v62 = vpop.f32.mrb[2].mxu1  ;;  %v4335_v57 = vld [vmem:[#allocation4 + $0x32c] ss:$16 sps:$4 sm:$0xff]   ;;  %v4330_v58 = vld [vmem:[#allocation4 + $0x320] ss:$16 sps:$4 sm:$0xff]  }
 0x1ed   :  { %v3778_v63 = vadd.f32 %v1651_v61, %v311_v49  ;;  %v3782_v0 = vadd.f32 %v1823_v62, %v319_v50  ;;  %v1653_v1 = vpop.f32.mrb[3].mxu0  ;;  %v1825_v2 = vpop.f32.mrb[3].mxu1  ;;  %v1828_v5 = vmax.f32 %v3776_v55, 0.0  ;;  %v1830_v6 = vmax.f32 %v3780_v56, 0.0  ;;  %v4323_v49 = vld [vmem:[#allocation4 + $0x2ec] ss:$16 sps:$4 sm:$0xff]  }
 0x1ee   :  { %v3779_v3 = vadd.f32 %v1653_v1, %v315_v51  ;;  %v3783_v4 = vadd.f32 %v1825_v2, %v323_v52  ;;  %v1829_v9 = vmax.f32 %v3777_v59, 0.0  ;;  %v1831_v10 = vmax.f32 %v3781_v60, 0.0  ;;  %v4318_v50 = vld [vmem:[#allocation4 + $0x2e0] ss:$16 sps:$4 sm:$0xff]   ;;  %v4321_v51 = vld [vmem:[#allocation4 + $0x2e8] ss:$16 sps:$4 sm:$0xff]  }
 0x1ef   :  { %v1832_v7 = vmax.f32 %v3778_v63, 0.0  ;;  %v1834_v8 = vmax.f32 %v3782_v0, 0.0  ;;  %v4326_v52 = vld [vmem:[#allocation4 + $0x304] ss:$16 sps:$4 sm:$0xff]   ;;  %v4327_v55 = vld [vmem:[#allocation4 + $0x308] ss:$16 sps:$4 sm:$0xff]  }
 0x1f0   :  { %v1833_v11 = vmax.f32 %v3779_v3, 0.0  ;;  %v1835_v12 = vmax.f32 %v3783_v4, 0.0  ;;  %v4332_v56 = vld [vmem:[#allocation4 + $0x324] ss:$16 sps:$4 sm:$0xff]   ;;  %v4333_v59 = vld [vmem:[#allocation4 + $0x328] ss:$16 sps:$4 sm:$0xff]  }
 0x1f1   :  { %v1836_v13 = vpack.c.bf16 %v1832_v7, %v1828_v5  ;;  %v4631_v14 = vpack.c.bf16 %v1834_v8, %v1830_v6  ;;  %v4338_v60 = vld [vmem:[#allocation4 + $0x344] ss:$16 sps:$4 sm:$0xff]   ;;  %v4341_v61 = vld [vmem:[#allocation4 + $0x34c] ss:$16 sps:$4 sm:$0xff]   ;;  %v4336_v62 = vld [vmem:[#allocation4 + $0x340] ss:$16 sps:$4 sm:$0xff]  }
 0x1f2   :  { %v1837_v15 = vpack.c.bf16 %v1833_v11, %v1829_v9  ;;  %v1839_v16 = vpack.c.bf16 %v1835_v12, %v1831_v10  ;;  %v4339_v63 = vld [vmem:[#allocation4 + $0x348] ss:$16 sps:$4 sm:$0xff]   ;;  %v4344_v0 = vld [vmem:[#allocation4 + $0x364] ss:$16 sps:$4 sm:$0xff]   ;;  %v4347_v1 = vld [vmem:[#allocation4 + $0x36c] ss:$16 sps:$4 sm:$0xff]  }
 0x1f3   :  { %v4342_v2 = vld [vmem:[#allocation4 + $0x360] ss:$16 sps:$4 sm:$0xff]   ;;  %v4345_v3 = vld [vmem:[#allocation4 + $0x368] ss:$16 sps:$4 sm:$0xff]   ;;  %v4350_v4 = vld [vmem:[#allocation4 + $0x384] ss:$16 sps:$4 sm:$0xff]  }
 0x1f4   :  { %2662 = vmatprep.mubr.bf16.mxu0 %v1837_v15  ;;  %2748 = vmatprep.mubr.bf16.mxu1 %v1837_v15  ;;  %v4353_v5 = vld [vmem:[#allocation4 + $0x38c] ss:$16 sps:$4 sm:$0xff]   ;;  %v4348_v6 = vld [vmem:[#allocation4 + $0x380] ss:$16 sps:$4 sm:$0xff]   ;;  %v4351_v7 = vld [vmem:[#allocation4 + $0x388] ss:$16 sps:$4 sm:$0xff]  }
 0x1f5   :  { %2663 = vmatmul.mubr.bf16.vlgmr.msra.gmra.mrb[4].mxu0 %v1836_v13  ;;  %2749 = vmatmul.mubr.bf16.vlgmr.msra.gmra.mrb[4].mxu1 %v1836_v13  ;;  %v4356_v8 = vld [vmem:[#allocation4 + $0x3a4] ss:$16 sps:$4 sm:$0xff]   ;;  %v4359_v9 = vld [vmem:[#allocation4 + $0x3ac] ss:$16 sps:$4 sm:$0xff]   ;;  %v4354_v10 = vld [vmem:[#allocation4 + $0x3a0] ss:$16 sps:$4 sm:$0xff]  }
 0x1f6   :  { %2674 = vmatpush1.bf16.msra.mxu0 %v4276_v17  ;;  %2760 = vmatpush1.bf16.msra.mxu1 %v4279_v18  ;;  %v4357_v11 = vld [vmem:[#allocation4 + $0x3a8] ss:$16 sps:$4 sm:$0xff]   ;;  %v4362_v12 = vld [vmem:[#allocation4 + $0x3c4] ss:$16 sps:$4 sm:$0xff]   ;;  %v4365_v13 = vld [vmem:[#allocation4 + $0x3cc] ss:$16 sps:$4 sm:$0xff]  }
 0x1f7   :  { %2705 = vmatprep.mubr.bf16.mxu0 %v1839_v16  ;;  %2791 = vmatprep.mubr.bf16.mxu1 %v1839_v16  ;;  %v4360_v15 = vld [vmem:[#allocation4 + $0x3c0] ss:$16 sps:$4 sm:$0xff]   ;;  %v4363_v16 = vld [vmem:[#allocation4 + $0x3c8] ss:$16 sps:$4 sm:$0xff]   ;;  %v4368_v17 = vld [vmem:[#allocation4 + $0x3e4] ss:$16 sps:$4 sm:$0xff]  }
 0x1f8   :  { %2675 = vmatprep.subr.bf16.mxu0 %v4284_v19  ;;  %2761 = vmatprep.subr.bf16.mxu1 %v4287_v20  ;;  %v4371_v18 = vld [vmem:[#allocation4 + $0x3ec] ss:$16 sps:$4 sm:$0xff]   ;;  %v4366_v19 = vld [vmem:[#allocation4 + $0x3e0] ss:$16 sps:$4 sm:$0xff]   ;;  %v4369_v20 = vld [vmem:[#allocation4 + $0x3e8] ss:$16 sps:$4 sm:$0xff]  }
 0x1fa   :  { %2676 = vmatpush1.bf16.msra.mxu0 %v4282_v21  ;;  %2762 = vmatpush1.bf16.msra.mxu1 %v4285_v22  ;;  %v4372_v21 = vld [vmem:[#allocation6 + $0x40] sm:$0xff]  }
 0x1fb   :  { %2677 = vmatprep.subr.bf16.mxu0 %v4290_v23  ;;  %2763 = vmatprep.subr.bf16.mxu1 %v4293_v24  ;;  %v4373_v22 = vld [vmem:[#allocation6 + $0xc0] sm:$0xff]  }
 0x1fc   :  { %v4374_v23 = vld [vmem:[#allocation6] sm:$0xff]  }
 0x1fd   :  { %v4375_v24 = vld [vmem:[#allocation6 + $0x80] sm:$0xff]  }
 0x1fe   :  { %2678 = vmatpush1.bf16.msra.mxu0 %v4288_v25  ;;  %2764 = vmatpush1.bf16.msra.mxu1 %v4291_v26  ;;  %v4376_v25 = vld [vmem:[#allocation6 + $0x48] sm:$0xff]  }
 0x1ff   :  { %2679 = vmatprep.subr.bf16.mxu0 %v4296_v27  ;;  %2765 = vmatprep.subr.bf16.mxu1 %v4299_v28  ;;  %v4377_v26 = vld [vmem:[#allocation6 + $0xc8] sm:$0xff]  }
 0x200   :  { %v4378_v27 = vld [vmem:[#allocation6 + $0x8] sm:$0xff]  }
 0x201   :  { %v4379_v28 = vld [vmem:[#allocation6 + $0x88] sm:$0xff]  }
 0x202   :  { %2680 = vmatpush1.bf16.msra.mxu0 %v4294_v29  ;;  %2766 = vmatpush1.bf16.msra.mxu1 %v4297_v30  ;;  %v4380_v29 = vld [vmem:[#allocation6 + $0x50] sm:$0xff]  }
 0x203   :  { %2681 = vmatprep.subr.bf16.mxu0 %v4302_v31  ;;  %2767 = vmatprep.subr.bf16.mxu1 %v4305_v32  ;;  %v4381_v30 = vld [vmem:[#allocation6 + $0xd0] sm:$0xff]  }
 0x204   :  { %v4382_v31 = vld [vmem:[#allocation6 + $0x10] sm:$0xff]  }
 0x205   :  { %v4383_v32 = vld [vmem:[#allocation6 + $0x90] sm:$0xff]  }
 0x206   :  { %2682 = vmatpush1.bf16.msra.mxu0 %v4300_v33  ;;  %2768 = vmatpush1.bf16.msra.mxu1 %v4303_v34  ;;  %v4384_v33 = vld [vmem:[#allocation6 + $0x58] sm:$0xff]  }
 0x207   :  { %2683 = vmatprep.subr.bf16.mxu0 %v4308_v35  ;;  %2769 = vmatprep.subr.bf16.mxu1 %v4311_v36  ;;  %v4385_v34 = vld [vmem:[#allocation6 + $0xd8] sm:$0xff]   ;;  %v4388_v36 = vld [vmem:[#allocation6 + $0x60] sm:$0xff]  }
 0x208   :  { %v4386_v35 = vld [vmem:[#allocation6 + $0x18] sm:$0xff]  }
 0x20a   :  { %2684 = vmatpush1.bf16.msra.mxu0 %v4306_v37  ;;  %2770 = vmatpush1.bf16.msra.mxu1 %v4309_v38  ;;  %v4389_v37 = vld [vmem:[#allocation6 + $0xe0] sm:$0xff]  }
 0x20b   :  { %2685 = vmatprep.subr.bf16.mxu0 %v4314_v39  ;;  %2771 = vmatprep.subr.bf16.mxu1 %v4317_v40  ;;  %v4390_v38 = vld [vmem:[#allocation6 + $0x20] sm:$0xff]   ;;  %v4392_v40 = vld [vmem:[#allocation6 + $0x68] sm:$0xff]  }
 0x20c   :  { %v4391_v39 = vld [vmem:[#allocation6 + $0xa0] sm:$0xff]  }
 0x20e   :  { %2686 = vmatpush1.bf16.msra.mxu0 %v4312_v41  ;;  %2772 = vmatpush1.bf16.msra.mxu1 %v4315_v42  ;;  %v4393_v41 = vld [vmem:[#allocation6 + $0xe8] sm:$0xff]  }
 0x20f   :  { %2687 = vmatprep.subr.bf16.mxu0 %v4320_v46  ;;  %2773 = vmatprep.subr.bf16.mxu1 %v4323_v49  ;;  %v4394_v42 = vld [vmem:[#allocation6 + $0x28] sm:$0xff]   ;;  %v4396_v49 = vld [vmem:[#allocation6 + $0x70] sm:$0xff]  }
 0x210   :  { %v4395_v46 = vld [vmem:[#allocation6 + $0xa8] sm:$0xff]  }
 0x212   :  { %2688 = vmatpush1.bf16.msra.mxu0 %v4318_v50  ;;  %2774 = vmatpush1.bf16.msra.mxu1 %v4321_v51  ;;  %v4397_v50 = vld [vmem:[#allocation6 + $0xf0] sm:$0xff]  }
 0x213   :  { %2689 = vmatprep.subr.bf16.mxu0 %v4326_v52  ;;  %2775 = vmatprep.subr.bf16.mxu1 %v4329_v53  ;;  %v4398_v51 = vld [vmem:[#allocation6 + $0x30] sm:$0xff]   ;;  %v4400_v53 = vld [vmem:[#allocation6 + $0x78] sm:$0xff]  }
 0x214   :  { %v4399_v52 = vld [vmem:[#allocation6 + $0xb0] sm:$0xff]  }
 0x216   :  { %2690 = vmatpush1.bf16.msra.mxu0 %v4324_v54  ;;  %2776 = vmatpush1.bf16.msra.mxu1 %v4327_v55  ;;  %v4401_v54 = vld [vmem:[#allocation6 + $0xf8] sm:$0xff]  }
 0x217   :  { %2691 = vmatprep.subr.bf16.mxu0 %v4332_v56  ;;  %2777 = vmatprep.subr.bf16.mxu1 %v4335_v57  ;;  %v4402_v55 = vld [vmem:[#allocation6 + $0x38] sm:$0xff]   ;;  %v4498_v57 = vmov 0.0  }
 0x218   :  { %v4403_v56 = vld [vmem:[#allocation6 + $0xb8] sm:$0xff]  }
 0x21a   :  { %2692 = vmatpush1.bf16.msra.mxu0 %v4330_v58  ;;  %2778 = vmatpush1.bf16.msra.mxu1 %v4333_v59  ;;  %v1968_v58 = vld [vmem:[%s4695_s4] sm:$0xf] }
 0x21b   :  { %2693 = vmatprep.subr.bf16.mxu0 %v4338_v60  ;;  %2779 = vmatprep.subr.bf16.mxu1 %v4341_v61  ;;  %v1973_v59 = vrot.slane %v1968_v58, %v310_v44  ;;  %v1981_v60 = vrot.slane %v1968_v58, %v318_v45  ;;  %v1977_v61 = vrot.slane %v1968_v58, %v314_v47 }
 0x21e   :  { %2694 = vmatpush1.bf16.msra.mxu0 %v4336_v62  ;;  %2780 = vmatpush1.bf16.msra.mxu1 %v4339_v63  ;;  %v1985_v62 = vrot.slane %v1968_v58, %v322_v48 }
 0x21f   :  { %2695 = vmatprep.subr.bf16.mxu0 %v4344_v0  ;;  %2781 = vmatprep.subr.bf16.mxu1 %v4347_v1 }
 0x222   :  { %2696 = vmatpush1.bf16.msra.mxu0 %v4342_v2  ;;  %2782 = vmatpush1.bf16.msra.mxu1 %v4345_v3 }
 0x223   :  { %2697 = vmatprep.subr.bf16.mxu0 %v4350_v4  ;;  %2783 = vmatprep.subr.bf16.mxu1 %v4353_v5 }
 0x226   :  { %2698 = vmatpush1.bf16.msra.mxu0 %v4348_v6  ;;  %2784 = vmatpush1.bf16.msra.mxu1 %v4351_v7 }
 0x227   :  { %2699 = vmatprep.subr.bf16.mxu0 %v4356_v8  ;;  %2785 = vmatprep.subr.bf16.mxu1 %v4359_v9 }
 0x22a   :  { %2700 = vmatpush1.bf16.msra.mxu0 %v4354_v10  ;;  %2786 = vmatpush1.bf16.msra.mxu1 %v4357_v11 }
 0x22b   :  { %2701 = vmatprep.subr.bf16.mxu0 %v4362_v12  ;;  %2787 = vmatprep.subr.bf16.mxu1 %v4365_v13 }
 0x22e   :  { %2702 = vmatpush1.bf16.msra.mxu0 %v4360_v15  ;;  %2788 = vmatpush1.bf16.msra.mxu1 %v4363_v16 }
 0x22f   :  { %2703 = vmatprep.subr.bf16.mxu0 %v4368_v17  ;;  %2789 = vmatprep.subr.bf16.mxu1 %v4371_v18 }
 0x232   :  { %2704 = vmatpush1.bf16.msra.mxu0 %v4366_v19  ;;  %2790 = vmatpush1.bf16.msra.mxu1 %v4369_v20 }
 0x233   :  { %3703 = vmatprep.subr.bf16.mxu0 %v4372_v21  ;;  %3725 = vmatprep.subr.bf16.mxu1 %v4373_v22 }
 0x235   :  { %2706 = vmatmul.mubr.bf16.vlgmr.msra.gmra.mrb[4].mxu0 %v4631_v14  ;;  %2792 = vmatmul.mubr.bf16.vlgmr.msra.gmra.mrb[4].mxu1 %v4631_v14  ;;  %v4387_v14 = vld [vmem:[#allocation6 + $0x98] sm:$0xff]  }
 0x236   :  { %3704 = vmatpush3.bf16.msra.mxu0 %v4374_v23  ;;  %3726 = vmatpush3.bf16.msra.mxu1 %v4375_v24  ;;  %v4404_v23 = vld [vmem:[%s4698_s7] sm:$0xff]   ;;  %v4405_v24 = vld [vmem:[%s4698_s7 + $0x8] sm:$0xff]  }
 0x237   :  { %3705 = vmatprep.subr.bf16.mxu0 %v4376_v25  ;;  %3727 = vmatprep.subr.bf16.mxu1 %v4377_v26  ;;  %v4406_v25 = vld [vmem:[%s4698_s7 + $0x10] sm:$0xff]   ;;  %v4407_v26 = vld [vmem:[%s4698_s7 + $0x18] sm:$0xff]  }
 0x23a   :  { %3706 = vmatpush3.bf16.msra.mxu0 %v4378_v27  ;;  %3728 = vmatpush3.bf16.msra.mxu1 %v4379_v28  ;;  %v4408_v27 = vld [vmem:[%s4698_s7 + $0x20] sm:$0xff]   ;;  %v4409_v28 = vld [vmem:[%s4698_s7 + $0x28] sm:$0xff]  }
 0x23b   :  { %3707 = vmatprep.subr.bf16.mxu0 %v4380_v29  ;;  %3729 = vmatprep.subr.bf16.mxu1 %v4381_v30  ;;  %v4410_v29 = vld [vmem:[%s4698_s7 + $0x30] sm:$0xff]   ;;  %v4411_v30 = vld [vmem:[%s4698_s7 + $0x38] sm:$0xff]  }
 0x23e   :  { %3708 = vmatpush3.bf16.msra.mxu0 %v4382_v31  ;;  %3730 = vmatpush3.bf16.msra.mxu1 %v4383_v32 }
 0x23f   :  { %3709 = vmatprep.subr.bf16.mxu0 %v4384_v33  ;;  %3731 = vmatprep.subr.bf16.mxu1 %v4385_v34  ;;  %v3661_v33 = vld [vmem:[%s4697_s6] ss:$0 sm:$0xff] }
 0x242   :  { %3710 = vmatpush3.bf16.msra.mxu0 %v4386_v35  ;;  %3732 = vmatpush3.bf16.msra.mxu1 %v4387_v14 }
 0x243   :  { %3711 = vmatprep.subr.bf16.mxu0 %v4388_v36  ;;  %3733 = vmatprep.subr.bf16.mxu1 %v4389_v37 }
 0x246   :  { %3712 = vmatpush3.bf16.msra.mxu0 %v4390_v38  ;;  %3734 = vmatpush3.bf16.msra.mxu1 %v4391_v39 }
 0x247   :  { %3713 = vmatprep.subr.bf16.mxu0 %v4392_v40  ;;  %3735 = vmatprep.subr.bf16.mxu1 %v4393_v41 }
 0x24a   :  { %3714 = vmatpush3.bf16.msra.mxu0 %v4394_v42  ;;  %3736 = vmatpush3.bf16.msra.mxu1 %v4395_v46 }
 0x24b   :  { %3715 = vmatprep.subr.bf16.mxu0 %v4396_v49  ;;  %3737 = vmatprep.subr.bf16.mxu1 %v4397_v50 }
 0x24e   :  { %3716 = vmatpush3.bf16.msra.mxu0 %v4398_v51  ;;  %3738 = vmatpush3.bf16.msra.mxu1 %v4399_v52 }
 0x24f   :  { %3717 = vmatprep.subr.bf16.mxu0 %v4400_v53  ;;  %3739 = vmatprep.subr.bf16.mxu1 %v4401_v54 }
 0x252   :  { %3718 = vmatpush3.bf16.msra.mxu0 %v4402_v55  ;;  %3740 = vmatpush3.bf16.msra.mxu1 %v4403_v56  ;;  %v3694_v55 = vld [vmem:[%s4699_s8] ss:$0 sm:$0xff] }
 0x253   :  { %3756 = vmatprep.subr.bf16.mxu0 %v4498_v57 }
 0x308   :  { %v2707_v63 = vpop.f32.mrb[4].mxu0  ;;  %v2793_v0 = vpop.f32.mrb[4].mxu1 }
 0x309   :  { %v3784_v1 = vadd.f32 %v2707_v63, %v1973_v59  ;;  %v3788_v2 = vadd.f32 %v2793_v0, %v1981_v60  ;;  %v2709_v3 = vpop.f32.mrb[5].mxu0  ;;  %v2795_v4 = vpop.f32.mrb[5].mxu1 }
 0x30a   :  { %v3785_v5 = vadd.f32 %v2709_v3, %v1977_v61  ;;  %v3789_v6 = vadd.f32 %v2795_v4, %v1985_v62  ;;  %v2711_v7 = vpop.f32.mrb[6].mxu0  ;;  %v2797_v8 = vpop.f32.mrb[6].mxu1 }
 0x30b   :  { %v3786_v44 = vadd.f32 %v2711_v7, %v1973_v59  ;;  %v3790_v9 = vadd.f32 %v2797_v8, %v1981_v60  ;;  %v2713_v10 = vpop.f32.mrb[7].mxu0  ;;  %v2799_v45 = vpop.f32.mrb[7].mxu1  ;;  %v2802_v47 = vmax.f32 %v3784_v1, 0.0  ;;  %v2804_v13 = vmax.f32 %v3788_v2, 0.0 }
 0x30c   :  { %v3787_v11 = vadd.f32 %v2713_v10, %v1977_v61  ;;  %v3791_v12 = vadd.f32 %v2799_v45, %v1985_v62  ;;  %v2803_v15 = vmax.f32 %v3785_v5, 0.0  ;;  %v2805_v16 = vmax.f32 %v3789_v6, 0.0 }
 0x30d   :  { %v2806_v43 = vmax.f32 %v3786_v44, 0.0  ;;  %v2808_v48 = vmax.f32 %v3790_v9, 0.0 }
 0x30e   :  { %v2807_v17 = vmax.f32 %v3787_v11, 0.0  ;;  %v2809_v18 = vmax.f32 %v3791_v12, 0.0 }
 0x30f   :  { %v2810_v19 = vpack.c.bf16 %v2806_v43, %v2802_v47  ;;  %v2812_v20 = vpack.c.bf16 %v2808_v48, %v2804_v13 }
 0x310   :  { %v2811_v21 = vpack.c.bf16 %v2807_v17, %v2803_v15  ;;  %v2813_v22 = vpack.c.bf16 %v2809_v18, %v2805_v16 }
 0x312   :  { %3109 = vmatprep.mubr.bf16.mxu0 %v2811_v21  ;;  %3150 = vmatprep.mubr.bf16.mxu1 %v2813_v22 }
 0x313   :  { %3110 = vmatmul.mubr.bf16.vlgmr.msra.gmra.mrb[8].mxu0 %v2810_v19  ;;  %3151 = vmatmul.mubr.bf16.vlgmr.msra.gmra.mrb[8].mxu1 %v2812_v20 }
 0x314   :  { %3757 = vmatpush3.bf16.msra.mxu0 %v4404_v23  ;;  %3772 = vmatprep.mubr.msk.bf16.mxu0 %vm4499_vm0, %v4498_v57 }
 0x315   :  { %3758 = vmatprep.subr.bf16.mxu0 %v4498_v57 }
 0x318   :  { %3759 = vmatpush3.bf16.msra.mxu0 %v4405_v24 }
 0x319   :  { %3760 = vmatprep.subr.bf16.mxu0 %v4498_v57 }
 0x31c   :  { %3761 = vmatpush3.bf16.msra.mxu0 %v4406_v25 }
 0x31d   :  { %3762 = vmatprep.subr.bf16.mxu0 %v4498_v57 }
 0x320   :  { %3763 = vmatpush3.bf16.msra.mxu0 %v4407_v26 }
 0x321   :  { %3764 = vmatprep.subr.bf16.mxu0 %v4498_v57 }
 0x324   :  { %3765 = vmatpush3.bf16.msra.mxu0 %v4408_v27 }
 0x325   :  { %3766 = vmatprep.subr.bf16.mxu0 %v4498_v57 }
 0x328   :  { %3767 = vmatpush3.bf16.msra.mxu0 %v4409_v28 }
 0x329   :  { %3768 = vmatprep.subr.bf16.mxu0 %v4498_v57 }
 0x32c   :  { %3769 = vmatpush3.bf16.msra.mxu0 %v4410_v29 }
 0x32d   :  { %3770 = vmatprep.subr.bf16.mxu0 %v4498_v57 }
 0x330   :  { %3771 = vmatpush3.bf16.msra.mxu0 %v4411_v30 }
 0x3e6   :  { %v3719_v31 = vpop.f32.mrb[8].mxu0  ;;  %v3741_v32 = vpop.f32.mrb[8].mxu1 }
 0x3e7   :  { %v3720_v34 = vpop.f32.mrb[9].mxu0  ;;  %v3742_v35 = vpop.f32.mrb[9].mxu1 }
 0x3e8   :  { %v3721_v14 = vadd.f32 %v3720_v34, %v3719_v31  ;;  %v3743_v36 = vadd.f32 %v3742_v35, %v3741_v32  ;;  %v3722_v37 = vpop.f32.mrb[10].mxu0  ;;  %v3744_v38 = vpop.f32.mrb[10].mxu1 }
 0x3e9   :  { %v3723_v39 = vpop.f32.mrb[11].mxu0  ;;  %v3745_v40 = vpop.f32.mrb[11].mxu1 }
 0x3ea   :  { %v3112_v41 = vadd.f32 %v3721_v14, %v3661_v33  ;;  %v3724_v42 = vadd.f32 %v3723_v39, %v3722_v37  ;;  %v3746_v46 = vadd.f32 %v3745_v40, %v3744_v38 }
 0x3ec   :  { %v3153_v49 = vadd.f32 %v3743_v36, %v3112_v41  ;;  %v3115_v50 = vadd.f32 %v3724_v42, %v3661_v33 }
 0x3ee   :  { %v3156_v51 = vadd.f32 %v3746_v46, %v3115_v50  ;;  %v3159_v52 = vmax.f32 %v3153_v49, 0.0 }
 0x3f0   :  { %v3160_v53 = vmax.f32 %v3156_v51, 0.0 }
 0x3f2   :  { %v3161_v54 = vpack.c.bf16 %v3160_v53, %v3159_v52 }
 0x3f4   :  { %3773 = vmatmul.mubr.bf16.vlgmr.msra.gmra.mrb[12].mxu0 %v3161_v54 }
 0x4c7   :  { %v3267_v56 = vpop.f32.mrb[12].mxu0 }
 0x4c8   :  { %v3268_v57 = vadd.f32 %v3694_v55, %v3267_v56  ;;  %v3774_v58 = vpop.f32.mrb[13].mxu0 }
 0x4c9   :  { %v3270_v59 = vpop.f32.mrb[14].mxu0 }
 0x4ca   :  { %3274 = vmax.xlane.f32.xlu0 %v3268_v57  ;;  %v3775_v60 = vpop.f32.mrb[15].mxu0  ;;  %v3271_v61 = vadd.f32 %v3694_v55, %v3270_v59 }
 0x4ce   :  { %3276 = vmax.xlane.f32.xlu0 %v3271_v61 }
 0x557   :  { %v3275_v62 = vpop.xlane.xlu0 %3274 }
 0x558   :  { %v3278_v63 = vsub.f32 %v3268_v57, %v3275_v62 }
 0x55a   :  { %v3280_v0 = vmul.f32 1.442695, %v3278_v63 }
 0x55b   :  { %v3277_v1 = vpop.xlane.xlu0 %3276 }
 0x55c   :  { %v3279_v2 = vsub.f32 %v3271_v61, %v3277_v1  ;;  %4412 = vpow2.f32 %v3280_v0 }
 0x55e   :  { %v3282_v3 = vmul.f32 1.442695, %v3279_v2 }
 0x560   :  { %4414 = vpow2.f32 %v3282_v3 }
 0x566   :  { %v4413_v4 = vpop.eup %4412 }
 0x567   :  { %3284 = vadd.xlane.f32.xlu1 %v4413_v4 }
 0x56a   :  { %v4415_v5 = vpop.eup %4414 }
 0x56b   :  { %3286 = vadd.xlane.f32.xlu1 %v4415_v5 }
 0x5f4   :  { %v3285_v6 = vpop.xlane.xlu1 %3284 }
 0x5f5   :  { %4416 = vlog2.f32 %v3285_v6 }
 0x5f8   :  { %v3287_v7 = vpop.xlane.xlu1 %3286 }
 0x5f9   :  { %4418 = vlog2.f32 %v3287_v7 }
 0x5ff   :  { %v4417_v8 = vpop.eup %4416 }
 0x600   :  { %v3289_v44 = vmul.f32 0.6931472, %v4417_v8 }
 0x602   :  { %v3292_v9 = vsub.f32 %v3278_v63, %v3289_v44 }
 0x603   :  { %v4419_v10 = vpop.eup %4418 }
 0x604   :  { %3294 = vst [vmem:[%s4700_s9] sm:$0xff] %v3292_v9  ;;  %v3291_v45 = vmul.f32 0.6931472, %v4419_v10 }
 0x606   :  { %v3293_v11 = vsub.f32 %v3279_v2, %v3291_v45 }
 0x608   :  { %3295 = vst [vmem:[%s4700_s9 + $0x8] sm:$0xff] %v3293_v11 }
 0x609   :  { %3300 = vsyncpa [#allocation3], 1 }
 0x60a   :  { %3301 = vsyncpa [#allocation5], 1 }

</bundles_post_ra>
